<compile_context>
chip_gen: v6e
topology: v6e:2x2x1
jax: 0.10.0
libtpu: 0.0.40
codegen_flags: <defaults>
</compile_context>

<pallas_src>
import functools

import jax
import jax.numpy as jnp
import numpy as np
from jax.experimental import pallas as pl
from jax.experimental.pallas import tpu as pltpu


# 3x3 tap offsets (dh, dw), kh-major to match weight.reshape(9, Cin, Cout).
TAPS = tuple((kh - 1, kw - 1) for kh in range(3) for kw in range(3))


def _res_units_kernel(*refs, reps, has_bn, W, lanes, C_pad, cast_bf16):
    if has_bn:
        (x_ref, w1_ref, b1_ref, w2_ref, b2_ref,
         s1_ref, t1_ref, s2_ref, t2_ref, m_ref, o_ref, patches_ref) = refs
    else:
        (x_ref, w1_ref, b1_ref, w2_ref, b2_ref, m_ref, o_ref, patches_ref) = refs
        s1_ref = t1_ref = s2_ref = t2_ref = None

    def conv3x3(a, w, b_row):
        # 3x3 SAME conv on the (C_pad, lanes) slab.  Only valid when `lanes`
        # covers whole images (the flat roll + 0/1 mask zeroes every halo tap).
        for t, (dh, dw) in enumerate(TAPS):
            s = dh * W + dw                        # flat spatial shift of this tap
            if s == 0:
                tap = a                            # center tap: no roll, no mask
            else:
                tap = pltpu.roll(a, shift=(-s) % lanes, axis=1)   # XLU lane roll
                tap = tap * m_ref[t]               # pre-broadcast mask, plain VMEM load
            # Stage through VMEM scratch: one (C_pad, lanes) tap live at a time.
            patches_ref[t * C_pad:(t + 1) * C_pad, :] = tap
        p = patches_ref[...]                       # (9*C_pad, lanes)
        if cast_bf16:
            p = p.astype(jnp.bfloat16)             # MXU-native operands; accumulate in f32
        return jnp.dot(w, p, preferred_element_type=jnp.float32) + b_row

    out = x_ref[...].astype(jnp.float32)           # (C_pad, lanes)
    # Static unroll over residual units (ideal for small R; for large R stream the
    # per-rep weights via a grid axis / lax.fori_loop to bound code size & VMEM).
    for r in range(reps):
        a = out
        if has_bn:
            a = a * s1_ref[r] + t1_ref[r]          # folded eval-mode BatchNorm
        a = jnp.maximum(a, 0.0)                    # ReLU
        h = conv3x3(a, w1_ref[r], b1_ref[r])
        if has_bn:
            h = h * s2_ref[r] + t2_ref[r]
        h = jnp.maximum(h, 0.0)                    # ReLU
        h = conv3x3(h, w2_ref[r], b2_ref[r])
        out = out + h                              # residual connection
    o_ref[...] = out.astype(o_ref.dtype)


def _fuse_conv_weight(w_hwio, C_pad):
    """(R,3,3,Ci,Co) HWIO -> (R, C_pad, 9*C_pad); big[r, co, t*C_pad + ci] = w[r, t, ci, co]."""
    R, _, _, ci, co = w_hwio.shape
    wt = jnp.transpose(w_hwio.reshape(R, 9, ci, co), (0, 3, 1, 2))       # (R, co, 9, ci)
    wt = jnp.pad(wt, ((0, 0), (0, C_pad - co), (0, 0), (0, C_pad - ci)))  # zero pad channels
    return wt.reshape(R, C_pad, 9 * C_pad)


def _tap_masks(H, W, images):
    """(9, images*H*W) 0/1 in-bounds masks per 3x3 tap (numpy, trace-time constant)."""
    hh, ww = np.meshgrid(np.arange(H), np.arange(W), indexing="ij")
    rows = []
    for dh, dw in TAPS:
        valid = (hh + dh >= 0) & (hh + dh < H) & (ww + dw >= 0) & (ww + dw < W)
        rows.append(np.tile(valid.reshape(-1), images))
    return np.stack(rows).astype(np.float32)


@functools.partial(jax.jit, static_argnames=("images_per_block", "matmul_dtype"))
def res_units(x_nchw, conv1_w, conv1_b, conv2_w, conv2_b, bn1=None, bn2=None,
              *, images_per_block=None, matmul_dtype=jnp.float32):
    """ResUnits forward.

    x_nchw  : (N, C, H, W)
    conv1_w : (R, 3, 3, C, C) HWIO weights, first conv of each residual unit
    conv1_b : (R, C)
    conv2_w : (R, 3, 3, C, C) HWIO weights, second conv of each residual unit
    conv2_b : (R, C)
    bn1/bn2 : optional (R, 2, C) folded eval-mode BN (scale, shift) per BnReluConv;
              None -> bn=False (the module default).
    images_per_block : images per grid block (must divide N; whole images only).
              Default: whole batch in one block.  Use smaller groups on v7x to
              shard the "parallel" grid axis across both TensorCores.
    matmul_dtype : jnp.float32 (default, exact) or jnp.bfloat16 (MXU-native operands).
    """
    N, C, H, W = x_nchw.shape
    R = conv1_w.shape[0]
    HW = H * W
    C_pad = max(8, ((C + 7) // 8) * 8)           # sublane-aligned channel count
    G = N if images_per_block is None else int(images_per_block)
    if N % G != 0:
        raise ValueError("images_per_block must divide the batch size")
    lanes = G * HW                                # lane extent per grid block (whole images!)
    has_bn = bn1 is not None
    cast_bf16 = jnp.dtype(matmul_dtype) == jnp.dtype(jnp.bfloat16)

    # Activations: (N, C, H, W) -> (C_pad, N*H*W): channels on sublanes, batch*spatial on lanes.
    x2 = jnp.transpose(x_nchw, (1, 0, 2, 3)).reshape(C, N * HW).astype(jnp.float32)
    x2 = jnp.pad(x2, ((0, C_pad - C), (0, 0)))

    w1 = _fuse_conv_weight(conv1_w, C_pad).astype(matmul_dtype)   # batch-independent, O(C^2)
    w2 = _fuse_conv_weight(conv2_w, C_pad).astype(matmul_dtype)
    b1 = jnp.pad(conv1_b.astype(jnp.float32), ((0, 0), (0, C_pad - C)))[:, :, None]
    b2 = jnp.pad(conv2_b.astype(jnp.float32), ((0, 0), (0, C_pad - C)))[:, :, None]

    # Border masks pre-broadcast on the host to (9, C_pad, lanes): no in-kernel
    # broadcast_in_dim is ever emitted (it would be re-emitted R*2 times per tap).
    masks = jnp.asarray(
        np.broadcast_to(_tap_masks(H, W, G)[:, None, :], (9, C_pad, lanes)).copy())

    inputs = [x2, w1, b1, w2, b2]
    in_specs = [
        pl.BlockSpec((C_pad, lanes), lambda i: (0, i)),
        pl.BlockSpec((R, C_pad, 9 * C_pad), lambda i: (0, 0, 0)),
        pl.BlockSpec((R, C_pad, 1), lambda i: (0, 0, 0)),
        pl.BlockSpec((R, C_pad, 9 * C_pad), lambda i: (0, 0, 0)),
        pl.BlockSpec((R, C_pad, 1), lambda i: (0, 0, 0)),
    ]
    if has_bn:
        # TODO(synk): training-mode BatchNorm2d (batch statistics over N,H,W) is not
        # computed in-kernel; only eval-mode BN folded to per-channel scale/shift.
        def _rows(v):                             # (R, C) -> (R, C_pad, 1)
            return jnp.pad(v.astype(jnp.float32), ((0, 0), (0, C_pad - C)))[:, :, None]
        inputs += [_rows(bn1[:, 0]), _rows(bn1[:, 1]), _rows(bn2[:, 0]), _rows(bn2[:, 1])]
        in_specs += [pl.BlockSpec((R, C_pad, 1), lambda i: (0, 0, 0))] * 4
    inputs.append(masks)
    in_specs.append(pl.BlockSpec((9, C_pad, lanes), lambda i: (0, 0, 0)))

    kernel = functools.partial(_res_units_kernel, reps=R, has_bn=has_bn, W=W,
                               lanes=lanes, C_pad=C_pad, cast_bf16=cast_bf16)

    out = pl.pallas_call(
        kernel,
        out_shape=jax.ShapeDtypeStruct((C_pad, N * HW), x_nchw.dtype),
        grid_spec=pltpu.PrefetchScalarGridSpec(
            num_scalar_prefetch=0,
            grid=(N // G,),                        # blocks of whole images along lanes
            in_specs=in_specs,
            out_specs=pl.BlockSpec((C_pad, lanes), lambda i: (0, i)),
            scratch_shapes=[pltpu.VMEM((9 * C_pad, lanes), jnp.float32)],  # im2col stage
        ),
        compiler_params=pltpu.CompilerParams(
            dimension_semantics=("parallel",)),    # image blocks are independent (v7x 2 TCs)
    )(*inputs)

    return out[:C].reshape(C, N, H, W).transpose(1, 0, 2, 3)


def _reference(x_nchw, conv1_w, conv1_b, conv2_w, conv2_b, bn1=None, bn2=None):
    """Plain-JAX reference (same math as the PyTorch module, bn eval-mode folded)."""
    x = jnp.transpose(x_nchw, (0, 2, 3, 1)).astype(jnp.float32)   # NHWC
    R = conv1_w.shape[0]
    dn = ("NHWC", "HWIO", "NHWC")
    hp = jax.lax.Precision.HIGHEST
    for r in range(R):
        a = x
        if bn1 is not None:
            a = a * bn1[r, 0].reshape(1, 1, 1, -1) + bn1[r, 1].reshape(1, 1, 1, -1)
        a = jnp.maximum(a, 0.0)
        h = jax.lax.conv_general_dilated(a, conv1_w[r], (1, 1), "SAME",
                                         dimension_numbers=dn, precision=hp)
        h = h + conv1_b[r].reshape(1, 1, 1, -1)
        if bn2 is not None:
            h = h * bn2[r, 0].reshape(1, 1, 1, -1) + bn2[r, 1].reshape(1, 1, 1, -1)
        h = jnp.maximum(h, 0.0)
        h = jax.lax.conv_general_dilated(h, conv2_w[r], (1, 1), "SAME",
                                         dimension_numbers=dn, precision=hp)
        h = h + conv2_b[r].reshape(1, 1, 1, -1)
        x = x + h
    return jnp.transpose(x, (0, 3, 1, 2))


if __name__ == "__main__":
    # ResUnits(ResidualUnit, nb_filter=4, repetations=2, bn=False)  (bn default False)
    N, C, H, W = 2, 4, 16, 16
    R = 2

    key = jax.random.PRNGKey(0)
    kx, k1w, k1b, k2w, k2b = jax.random.split(key, 5)

    x = jax.random.normal(kx, (N, C, H, W), dtype=jnp.float32)

    # Deterministic Conv2d(4->4, 3x3) inits (kaiming-uniform-like), HWIO layout.
    fan_in = C * 3 * 3
    bound = 1.0 / np.sqrt(fan_in)
    conv1_w = jax.random.uniform(k1w, (R, 3, 3, C, C), jnp.float32, -bound, bound)
    conv1_b = jax.random.uniform(k1b, (R, C), jnp.float32, -bound, bound)
    conv2_w = jax.random.uniform(k2w, (R, 3, 3, C, C), jnp.float32, -bound, bound)
    conv2_b = jax.random.uniform(k2b, (R, C), jnp.float32, -bound, bound)

    ref = jax.block_until_ready(_reference(x, conv1_w, conv1_b, conv2_w, conv2_b))

    # 1) Default path: whole batch in one grid step, f32 MXU operands.
    out = jax.block_until_ready(res_units(x, conv1_w, conv1_b, conv2_w, conv2_b))
    np.testing.assert_allclose(np.asarray(out), np.asarray(ref), atol=1e-4, rtol=1e-4)

    # 2) Batch tiled over a "parallel" grid axis (one image per block) — v7x 2-TC path.
    out_tiled = jax.block_until_ready(
        res_units(x, conv1_w, conv1_b, conv2_w, conv2_b, images_per_block=1))
    np.testing.assert_allclose(np.asarray(out_tiled), np.asarray(ref), atol=1e-4, rtol=1e-4)

    # 3) bf16 MXU operands (native MXU dtype on v5e/v6e/v7x); elementwise math stays f32.
    out_bf16 = jax.block_until_ready(
        res_units(x, conv1_w, conv1_b, conv2_w, conv2_b, matmul_dtype=jnp.bfloat16))
    np.testing.assert_allclose(np.asarray(out_bf16), np.asarray(ref), atol=5e-2, rtol=5e-2)

    print("KERNEL_OK")
</pallas_src>

<mosaic_0001>
module attributes {stable_mosaic.version = 11 : i64} {
  func.func @_res_units_kernel(%arg0: i32, %arg1: memref<8x512xf32, #tpu.memory_space<vmem>>, %arg2: memref<2x8x72xf32, #tpu.memory_space<vmem>>, %arg3: memref<2x8x1xf32, #tpu.memory_space<vmem>>, %arg4: memref<2x8x72xf32, #tpu.memory_space<vmem>>, %arg5: memref<2x8x1xf32, #tpu.memory_space<vmem>>, %arg6: memref<9x8x512xf32, #tpu.memory_space<vmem>>, %arg7: memref<8x512xf32, #tpu.memory_space<vmem>>, %arg8: memref<72x512xf32, #tpu.memory_space<vmem>>) attributes {dimension_semantics = [#tpu.dimension_semantics<parallel>], iteration_bounds = array<i64: 1>, scalar_prefetch = 0 : i64, scratch_operands = 1 : i64, tpu.core_type = #tpu.core_type<tc>, window_params = [{transform_indices = @transform_0, window_bounds = array<i64: 8, 512>}, {pipeline_mode = #tpu.pipeline_mode<synchronous>, transform_indices = @transform_1, window_bounds = array<i64: 2, 8, 72>}, {pipeline_mode = #tpu.pipeline_mode<synchronous>, transform_indices = @transform_2, window_bounds = array<i64: 2, 8, 1>}, {pipeline_mode = #tpu.pipeline_mode<synchronous>, transform_indices = @transform_3, window_bounds = array<i64: 2, 8, 72>}, {pipeline_mode = #tpu.pipeline_mode<synchronous>, transform_indices = @transform_4, window_bounds = array<i64: 2, 8, 1>}, {pipeline_mode = #tpu.pipeline_mode<synchronous>, transform_indices = @transform_5, window_bounds = array<i64: 9, 8, 512>}, {transform_indices = @transform_6, window_bounds = array<i64: 8, 512>}]} {
    %c0 = arith.constant 0 : index
    %c0_0 = arith.constant 0 : index
    %0 = vector.load %arg1[%c0, %c0_0] : memref<8x512xf32, #tpu.memory_space<vmem>>, vector<8x512xf32>
    %cst = arith.constant 0.000000e+00 : f32
    %1 = vector.broadcast %cst : f32 to vector<8x512xf32>
    %2 = arith.maximumf %0, %1 : vector<8x512xf32>
    %c0_1 = arith.constant 0 : index
    %c0_2 = arith.constant 0 : index
    %c0_3 = arith.constant 0 : index
    %3 = vector.load %arg2[%c0_1, %c0_2, %c0_3] : memref<2x8x72xf32, #tpu.memory_space<vmem>>, vector<1x8x72xf32>
    %4 = vector.shape_cast %3 : vector<1x8x72xf32> to vector<8x72xf32>
    %c0_4 = arith.constant 0 : index
    %c0_5 = arith.constant 0 : index
    %c0_6 = arith.constant 0 : index
    %5 = vector.load %arg3[%c0_4, %c0_5, %c0_6] : memref<2x8x1xf32, #tpu.memory_space<vmem>>, vector<1x8x1xf32>
    %6 = vector.shape_cast %5 : vector<1x8x1xf32> to vector<8x1xf32>
    %c17_i32 = arith.constant 17 : i32
    %7 = tpu.dynamic_rotate %2 by %c17_i32 dim 1 : vector<8x512xf32>, i32 -> vector<8x512xf32>
    %c0_7 = arith.constant 0 : index
    %c0_8 = arith.constant 0 : index
    %c0_9 = arith.constant 0 : index
    %8 = vector.load %arg6[%c0_7, %c0_8, %c0_9] : memref<9x8x512xf32, #tpu.memory_space<vmem>>, vector<1x8x512xf32>
    %9 = vector.shape_cast %8 : vector<1x8x512xf32> to vector<8x512xf32>
    %10 = arith.mulf %7, %9 : vector<8x512xf32>
    %c0_10 = arith.constant 0 : index
    %c0_11 = arith.constant 0 : index
    %11 = vector.load %arg8[%c0_10, %c0_11] : memref<72x512xf32, #tpu.memory_space<vmem>>, vector<8x512xf32>
    tpu.vector_store %arg8[%c0_10, %c0_11], %10 {strides = array<i32>} : memref<72x512xf32, #tpu.memory_space<vmem>>, vector<8x512xf32>,
    %c16_i32 = arith.constant 16 : i32
    %12 = tpu.dynamic_rotate %2 by %c16_i32 dim 1 : vector<8x512xf32>, i32 -> vector<8x512xf32>
    %c1 = arith.constant 1 : index
    %c0_12 = arith.constant 0 : index
    %c0_13 = arith.constant 0 : index
    %13 = vector.load %arg6[%c1, %c0_12, %c0_13] : memref<9x8x512xf32, #tpu.memory_space<vmem>>, vector<1x8x512xf32>
    %14 = vector.shape_cast %13 : vector<1x8x512xf32> to vector<8x512xf32>
    %15 = arith.mulf %12, %14 : vector<8x512xf32>
    %c8 = arith.constant 8 : index
    %c0_14 = arith.constant 0 : index
    %16 = vector.load %arg8[%c8, %c0_14] : memref<72x512xf32, #tpu.memory_space<vmem>>, vector<8x512xf32>
    tpu.vector_store %arg8[%c8, %c0_14], %15 {strides = array<i32>} : memref<72x512xf32, #tpu.memory_space<vmem>>, vector<8x512xf32>,
    %c15_i32 = arith.constant 15 : i32
    %17 = tpu.dynamic_rotate %2 by %c15_i32 dim 1 : vector<8x512xf32>, i32 -> vector<8x512xf32>
    %c2 = arith.constant 2 : index
    %c0_15 = arith.constant 0 : index
    %c0_16 = arith.constant 0 : index
    %18 = vector.load %arg6[%c2, %c0_15, %c0_16] : memref<9x8x512xf32, #tpu.memory_space<vmem>>, vector<1x8x512xf32>
    %19 = vector.shape_cast %18 : vector<1x8x512xf32> to vector<8x512xf32>
    %20 = arith.mulf %17, %19 : vector<8x512xf32>
    %c16 = arith.constant 16 : index
    %c0_17 = arith.constant 0 : index
    %21 = vector.load %arg8[%c16, %c0_17] : memref<72x512xf32, #tpu.memory_space<vmem>>, vector<8x512xf32>
    tpu.vector_store %arg8[%c16, %c0_17], %20 {strides = array<i32>} : memref<72x512xf32, #tpu.memory_space<vmem>>, vector<8x512xf32>,
    %c1_i32 = arith.constant 1 : i32
    %22 = tpu.dynamic_rotate %2 by %c1_i32 dim 1 : vector<8x512xf32>, i32 -> vector<8x512xf32>
    %c3 = arith.constant 3 : index
    %c0_18 = arith.constant 0 : index
    %c0_19 = arith.constant 0 : index
    %23 = vector.load %arg6[%c3, %c0_18, %c0_19] : memref<9x8x512xf32, #tpu.memory_space<vmem>>, vector<1x8x512xf32>
    %24 = vector.shape_cast %23 : vector<1x8x512xf32> to vector<8x512xf32>
    %25 = arith.mulf %22, %24 : vector<8x512xf32>
    %c24 = arith.constant 24 : index
    %c0_20 = arith.constant 0 : index
    %26 = vector.load %arg8[%c24, %c0_20] : memref<72x512xf32, #tpu.memory_space<vmem>>, vector<8x512xf32>
    tpu.vector_store %arg8[%c24, %c0_20], %25 {strides = array<i32>} : memref<72x512xf32, #tpu.memory_space<vmem>>, vector<8x512xf32>,
    %c32 = arith.constant 32 : index
    %c0_21 = arith.constant 0 : index
    %27 = vector.load %arg8[%c32, %c0_21] : memref<72x512xf32, #tpu.memory_space<vmem>>, vector<8x512xf32>
    tpu.vector_store %arg8[%c32, %c0_21], %2 {strides = array<i32>} : memref<72x512xf32, #tpu.memory_space<vmem>>, vector<8x512xf32>,
    %c511_i32 = arith.constant 511 : i32
    %28 = tpu.dynamic_rotate %2 by %c511_i32 dim 1 : vector<8x512xf32>, i32 -> vector<8x512xf32>
    %c5 = arith.constant 5 : index
    %c0_22 = arith.constant 0 : index
    %c0_23 = arith.constant 0 : index
    %29 = vector.load %arg6[%c5, %c0_22, %c0_23] : memref<9x8x512xf32, #tpu.memory_space<vmem>>, vector<1x8x512xf32>
    %30 = vector.shape_cast %29 : vector<1x8x512xf32> to vector<8x512xf32>
    %31 = arith.mulf %28, %30 : vector<8x512xf32>
    %c40 = arith.constant 40 : index
    %c0_24 = arith.constant 0 : index
    %32 = vector.load %arg8[%c40, %c0_24] : memref<72x512xf32, #tpu.memory_space<vmem>>, vector<8x512xf32>
    tpu.vector_store %arg8[%c40, %c0_24], %31 {strides = array<i32>} : memref<72x512xf32, #tpu.memory_space<vmem>>, vector<8x512xf32>,
    %c497_i32 = arith.constant 497 : i32
    %33 = tpu.dynamic_rotate %2 by %c497_i32 dim 1 : vector<8x512xf32>, i32 -> vector<8x512xf32>
    %c6 = arith.constant 6 : index
    %c0_25 = arith.constant 0 : index
    %c0_26 = arith.constant 0 : index
    %34 = vector.load %arg6[%c6, %c0_25, %c0_26] : memref<9x8x512xf32, #tpu.memory_space<vmem>>, vector<1x8x512xf32>
    %35 = vector.shape_cast %34 : vector<1x8x512xf32> to vector<8x512xf32>
    %36 = arith.mulf %33, %35 : vector<8x512xf32>
    %c48 = arith.constant 48 : index
    %c0_27 = arith.constant 0 : index
    %37 = vector.load %arg8[%c48, %c0_27] : memref<72x512xf32, #tpu.memory_space<vmem>>, vector<8x512xf32>
    tpu.vector_store %arg8[%c48, %c0_27], %36 {strides = array<i32>} : memref<72x512xf32, #tpu.memory_space<vmem>>, vector<8x512xf32>,
    %c496_i32 = arith.constant 496 : i32
    %38 = tpu.dynamic_rotate %2 by %c496_i32 dim 1 : vector<8x512xf32>, i32 -> vector<8x512xf32>
    %c7 = arith.constant 7 : index
    %c0_28 = arith.constant 0 : index
    %c0_29 = arith.constant 0 : index
    %39 = vector.load %arg6[%c7, %c0_28, %c0_29] : memref<9x8x512xf32, #tpu.memory_space<vmem>>, vector<1x8x512xf32>
    %40 = vector.shape_cast %39 : vector<1x8x512xf32> to vector<8x512xf32>
    %41 = arith.mulf %38, %40 : vector<8x512xf32>
    %c56 = arith.constant 56 : index
    %c0_30 = arith.constant 0 : index
    %42 = vector.load %arg8[%c56, %c0_30] : memref<72x512xf32, #tpu.memory_space<vmem>>, vector<8x512xf32>
    tpu.vector_store %arg8[%c56, %c0_30], %41 {strides = array<i32>} : memref<72x512xf32, #tpu.memory_space<vmem>>, vector<8x512xf32>,
    %c495_i32 = arith.constant 495 : i32
    %43 = tpu.dynamic_rotate %2 by %c495_i32 dim 1 : vector<8x512xf32>, i32 -> vector<8x512xf32>
    %c8_31 = arith.constant 8 : index
    %c0_32 = arith.constant 0 : index
    %c0_33 = arith.constant 0 : index
    %44 = vector.load %arg6[%c8_31, %c0_32, %c0_33] : memref<9x8x512xf32, #tpu.memory_space<vmem>>, vector<1x8x512xf32>
    %45 = vector.shape_cast %44 : vector<1x8x512xf32> to vector<8x512xf32>
    %46 = arith.mulf %43, %45 : vector<8x512xf32>
    %c64 = arith.constant 64 : index
    %c0_34 = arith.constant 0 : index
    %47 = vector.load %arg8[%c64, %c0_34] : memref<72x512xf32, #tpu.memory_space<vmem>>, vector<8x512xf32>
    tpu.vector_store %arg8[%c64, %c0_34], %46 {strides = array<i32>} : memref<72x512xf32, #tpu.memory_space<vmem>>, vector<8x512xf32>,
    %c0_35 = arith.constant 0 : index
    %c0_36 = arith.constant 0 : index
    %48 = vector.load %arg8[%c0_35, %c0_36] : memref<72x512xf32, #tpu.memory_space<vmem>>, vector<72x512xf32>
    %cst_37 = arith.constant dense<0.000000e+00> : vector<8x512xf32>
    %49 = tpu.matmul %4, %48, %cst_37 {dimension_numbers = #tpu.dot_dimension_numbers<[1], [0], [0], [1], [0, 0, 1, 1], [], []>} : vector<8x72xf32>, vector<72x512xf32>, vector<8x512xf32> -> vector<8x512xf32>
    %50 = vector.broadcast %6 : vector<8x1xf32> to vector<8x512xf32>
    %51 = arith.addf %49, %50 : vector<8x512xf32>
    %cst_38 = arith.constant 0.000000e+00 : f32
    %52 = vector.broadcast %cst_38 : f32 to vector<8x512xf32>
    %53 = arith.maximumf %51, %52 : vector<8x512xf32>
    %c0_39 = arith.constant 0 : index
    %c0_40 = arith.constant 0 : index
    %c0_41 = arith.constant 0 : index
    %54 = vector.load %arg4[%c0_39, %c0_40, %c0_41] : memref<2x8x72xf32, #tpu.memory_space<vmem>>, vector<1x8x72xf32>
    %55 = vector.shape_cast %54 : vector<1x8x72xf32> to vector<8x72xf32>
    %c0_42 = arith.constant 0 : index
    %c0_43 = arith.constant 0 : index
    %c0_44 = arith.constant 0 : index
    %56 = vector.load %arg5[%c0_42, %c0_43, %c0_44] : memref<2x8x1xf32, #tpu.memory_space<vmem>>, vector<1x8x1xf32>
    %57 = vector.shape_cast %56 : vector<1x8x1xf32> to vector<8x1xf32>
    %c17_i32_45 = arith.constant 17 : i32
    %58 = tpu.dynamic_rotate %53 by %c17_i32_45 dim 1 : vector<8x512xf32>, i32 -> vector<8x512xf32>
    %c0_46 = arith.constant 0 : index
    %c0_47 = arith.constant 0 : index
    %c0_48 = arith.constant 0 : index
    %59 = vector.load %arg6[%c0_46, %c0_47, %c0_48] : memref<9x8x512xf32, #tpu.memory_space<vmem>>, vector<1x8x512xf32>
    %60 = vector.shape_cast %59 : vector<1x8x512xf32> to vector<8x512xf32>
    %61 = arith.mulf %58, %60 : vector<8x512xf32>
    %c0_49 = arith.constant 0 : index
    %c0_50 = arith.constant 0 : index
    %62 = vector.load %arg8[%c0_49, %c0_50] : memref<72x512xf32, #tpu.memory_space<vmem>>, vector<8x512xf32>
    tpu.vector_store %arg8[%c0_49, %c0_50], %61 {strides = array<i32>} : memref<72x512xf32, #tpu.memory_space<vmem>>, vector<8x512xf32>,
    %c16_i32_51 = arith.constant 16 : i32
    %63 = tpu.dynamic_rotate %53 by %c16_i32_51 dim 1 : vector<8x512xf32>, i32 -> vector<8x512xf32>
    %c1_52 = arith.constant 1 : index
    %c0_53 = arith.constant 0 : index
    %c0_54 = arith.constant 0 : index
    %64 = vector.load %arg6[%c1_52, %c0_53, %c0_54] : memref<9x8x512xf32, #tpu.memory_space<vmem>>, vector<1x8x512xf32>
    %65 = vector.shape_cast %64 : vector<1x8x512xf32> to vector<8x512xf32>
    %66 = arith.mulf %63, %65 : vector<8x512xf32>
    %c8_55 = arith.constant 8 : index
    %c0_56 = arith.constant 0 : index
    %67 = vector.load %arg8[%c8_55, %c0_56] : memref<72x512xf32, #tpu.memory_space<vmem>>, vector<8x512xf32>
    tpu.vector_store %arg8[%c8_55, %c0_56], %66 {strides = array<i32>} : memref<72x512xf32, #tpu.memory_space<vmem>>, vector<8x512xf32>,
    %c15_i32_57 = arith.constant 15 : i32
    %68 = tpu.dynamic_rotate %53 by %c15_i32_57 dim 1 : vector<8x512xf32>, i32 -> vector<8x512xf32>
    %c2_58 = arith.constant 2 : index
    %c0_59 = arith.constant 0 : index
    %c0_60 = arith.constant 0 : index
    %69 = vector.load %arg6[%c2_58, %c0_59, %c0_60] : memref<9x8x512xf32, #tpu.memory_space<vmem>>, vector<1x8x512xf32>
    %70 = vector.shape_cast %69 : vector<1x8x512xf32> to vector<8x512xf32>
    %71 = arith.mulf %68, %70 : vector<8x512xf32>
    %c16_61 = arith.constant 16 : index
    %c0_62 = arith.constant 0 : index
    %72 = vector.load %arg8[%c16_61, %c0_62] : memref<72x512xf32, #tpu.memory_space<vmem>>, vector<8x512xf32>
    tpu.vector_store %arg8[%c16_61, %c0_62], %71 {strides = array<i32>} : memref<72x512xf32, #tpu.memory_space<vmem>>, vector<8x512xf32>,
    %c1_i32_63 = arith.constant 1 : i32
    %73 = tpu.dynamic_rotate %53 by %c1_i32_63 dim 1 : vector<8x512xf32>, i32 -> vector<8x512xf32>
    %c3_64 = arith.constant 3 : index
    %c0_65 = arith.constant 0 : index
    %c0_66 = arith.constant 0 : index
    %74 = vector.load %arg6[%c3_64, %c0_65, %c0_66] : memref<9x8x512xf32, #tpu.memory_space<vmem>>, vector<1x8x512xf32>
    %75 = vector.shape_cast %74 : vector<1x8x512xf32> to vector<8x512xf32>
    %76 = arith.mulf %73, %75 : vector<8x512xf32>
    %c24_67 = arith.constant 24 : index
    %c0_68 = arith.constant 0 : index
    %77 = vector.load %arg8[%c24_67, %c0_68] : memref<72x512xf32, #tpu.memory_space<vmem>>, vector<8x512xf32>
    tpu.vector_store %arg8[%c24_67, %c0_68], %76 {strides = array<i32>} : memref<72x512xf32, #tpu.memory_space<vmem>>, vector<8x512xf32>,
    %c32_69 = arith.constant 32 : index
    %c0_70 = arith.constant 0 : index
    %78 = vector.load %arg8[%c32_69, %c0_70] : memref<72x512xf32, #tpu.memory_space<vmem>>, vector<8x512xf32>
    tpu.vector_store %arg8[%c32_69, %c0_70], %53 {strides = array<i32>} : memref<72x512xf32, #tpu.memory_space<vmem>>, vector<8x512xf32>,
    %c511_i32_71 = arith.constant 511 : i32
    %79 = tpu.dynamic_rotate %53 by %c511_i32_71 dim 1 : vector<8x512xf32>, i32 -> vector<8x512xf32>
    %c5_72 = arith.constant 5 : index
    %c0_73 = arith.constant 0 : index
    %c0_74 = arith.constant 0 : index
    %80 = vector.load %arg6[%c5_72, %c0_73, %c0_74] : memref<9x8x512xf32, #tpu.memory_space<vmem>>, vector<1x8x512xf32>
    %81 = vector.shape_cast %80 : vector<1x8x512xf32> to vector<8x512xf32>
    %82 = arith.mulf %79, %81 : vector<8x512xf32>
    %c40_75 = arith.constant 40 : index
    %c0_76 = arith.constant 0 : index
    %83 = vector.load %arg8[%c40_75, %c0_76] : memref<72x512xf32, #tpu.memory_space<vmem>>, vector<8x512xf32>
    tpu.vector_store %arg8[%c40_75, %c0_76], %82 {strides = array<i32>} : memref<72x512xf32, #tpu.memory_space<vmem>>, vector<8x512xf32>,
    %c497_i32_77 = arith.constant 497 : i32
    %84 = tpu.dynamic_rotate %53 by %c497_i32_77 dim 1 : vector<8x512xf32>, i32 -> vector<8x512xf32>
    %c6_78 = arith.constant 6 : index
    %c0_79 = arith.constant 0 : index
    %c0_80 = arith.constant 0 : index
    %85 = vector.load %arg6[%c6_78, %c0_79, %c0_80] : memref<9x8x512xf32, #tpu.memory_space<vmem>>, vector<1x8x512xf32>
    %86 = vector.shape_cast %85 : vector<1x8x512xf32> to vector<8x512xf32>
    %87 = arith.mulf %84, %86 : vector<8x512xf32>
    %c48_81 = arith.constant 48 : index
    %c0_82 = arith.constant 0 : index
    %88 = vector.load %arg8[%c48_81, %c0_82] : memref<72x512xf32, #tpu.memory_space<vmem>>, vector<8x512xf32>
    tpu.vector_store %arg8[%c48_81, %c0_82], %87 {strides = array<i32>} : memref<72x512xf32, #tpu.memory_space<vmem>>, vector<8x512xf32>,
    %c496_i32_83 = arith.constant 496 : i32
    %89 = tpu.dynamic_rotate %53 by %c496_i32_83 dim 1 : vector<8x512xf32>, i32 -> vector<8x512xf32>
    %c7_84 = arith.constant 7 : index
    %c0_85 = arith.constant 0 : index
    %c0_86 = arith.constant 0 : index
    %90 = vector.load %arg6[%c7_84, %c0_85, %c0_86] : memref<9x8x512xf32, #tpu.memory_space<vmem>>, vector<1x8x512xf32>
    %91 = vector.shape_cast %90 : vector<1x8x512xf32> to vector<8x512xf32>
    %92 = arith.mulf %89, %91 : vector<8x512xf32>
    %c56_87 = arith.constant 56 : index
    %c0_88 = arith.constant 0 : index
    %93 = vector.load %arg8[%c56_87, %c0_88] : memref<72x512xf32, #tpu.memory_space<vmem>>, vector<8x512xf32>
    tpu.vector_store %arg8[%c56_87, %c0_88], %92 {strides = array<i32>} : memref<72x512xf32, #tpu.memory_space<vmem>>, vector<8x512xf32>,
    %c495_i32_89 = arith.constant 495 : i32
    %94 = tpu.dynamic_rotate %53 by %c495_i32_89 dim 1 : vector<8x512xf32>, i32 -> vector<8x512xf32>
    %c8_90 = arith.constant 8 : index
    %c0_91 = arith.constant 0 : index
    %c0_92 = arith.constant 0 : index
    %95 = vector.load %arg6[%c8_90, %c0_91, %c0_92] : memref<9x8x512xf32, #tpu.memory_space<vmem>>, vector<1x8x512xf32>
    %96 = vector.shape_cast %95 : vector<1x8x512xf32> to vector<8x512xf32>
    %97 = arith.mulf %94, %96 : vector<8x512xf32>
    %c64_93 = arith.constant 64 : index
    %c0_94 = arith.constant 0 : index
    %98 = vector.load %arg8[%c64_93, %c0_94] : memref<72x512xf32, #tpu.memory_space<vmem>>, vector<8x512xf32>
    tpu.vector_store %arg8[%c64_93, %c0_94], %97 {strides = array<i32>} : memref<72x512xf32, #tpu.memory_space<vmem>>, vector<8x512xf32>,
    %c0_95 = arith.constant 0 : index
    %c0_96 = arith.constant 0 : index
    %99 = vector.load %arg8[%c0_95, %c0_96] : memref<72x512xf32, #tpu.memory_space<vmem>>, vector<72x512xf32>
    %cst_97 = arith.constant dense<0.000000e+00> : vector<8x512xf32>
    %100 = tpu.matmul %55, %99, %cst_97 {dimension_numbers = #tpu.dot_dimension_numbers<[1], [0], [0], [1], [0, 0, 1, 1], [], []>} : vector<8x72xf32>, vector<72x512xf32>, vector<8x512xf32> -> vector<8x512xf32>
    %101 = vector.broadcast %57 : vector<8x1xf32> to vector<8x512xf32>
    %102 = arith.addf %100, %101 : vector<8x512xf32>
    %103 = arith.addf %0, %102 : vector<8x512xf32>
    %cst_98 = arith.constant 0.000000e+00 : f32
    %104 = vector.broadcast %cst_98 : f32 to vector<8x512xf32>
    %105 = arith.maximumf %103, %104 : vector<8x512xf32>
    %c1_99 = arith.constant 1 : index
    %c0_100 = arith.constant 0 : index
    %c0_101 = arith.constant 0 : index
    %106 = vector.load %arg2[%c1_99, %c0_100, %c0_101] : memref<2x8x72xf32, #tpu.memory_space<vmem>>, vector<1x8x72xf32>
    %107 = vector.shape_cast %106 : vector<1x8x72xf32> to vector<8x72xf32>
    %c1_102 = arith.constant 1 : index
    %c0_103 = arith.constant 0 : index
    %c0_104 = arith.constant 0 : index
    %108 = vector.load %arg3[%c1_102, %c0_103, %c0_104] : memref<2x8x1xf32, #tpu.memory_space<vmem>>, vector<1x8x1xf32>
    %109 = vector.shape_cast %108 : vector<1x8x1xf32> to vector<8x1xf32>
    %c17_i32_105 = arith.constant 17 : i32
    %110 = tpu.dynamic_rotate %105 by %c17_i32_105 dim 1 : vector<8x512xf32>, i32 -> vector<8x512xf32>
    %c0_106 = arith.constant 0 : index
    %c0_107 = arith.constant 0 : index
    %c0_108 = arith.constant 0 : index
    %111 = vector.load %arg6[%c0_106, %c0_107, %c0_108] : memref<9x8x512xf32, #tpu.memory_space<vmem>>, vector<1x8x512xf32>
    %112 = vector.shape_cast %111 : vector<1x8x512xf32> to vector<8x512xf32>
    %113 = arith.mulf %110, %112 : vector<8x512xf32>
    %c0_109 = arith.constant 0 : index
    %c0_110 = arith.constant 0 : index
    %114 = vector.load %arg8[%c0_109, %c0_110] : memref<72x512xf32, #tpu.memory_space<vmem>>, vector<8x512xf32>
    tpu.vector_store %arg8[%c0_109, %c0_110], %113 {strides = array<i32>} : memref<72x512xf32, #tpu.memory_space<vmem>>, vector<8x512xf32>,
    %c16_i32_111 = arith.constant 16 : i32
    %115 = tpu.dynamic_rotate %105 by %c16_i32_111 dim 1 : vector<8x512xf32>, i32 -> vector<8x512xf32>
    %c1_112 = arith.constant 1 : index
    %c0_113 = arith.constant 0 : index
    %c0_114 = arith.constant 0 : index
    %116 = vector.load %arg6[%c1_112, %c0_113, %c0_114] : memref<9x8x512xf32, #tpu.memory_space<vmem>>, vector<1x8x512xf32>
    %117 = vector.shape_cast %116 : vector<1x8x512xf32> to vector<8x512xf32>
    %118 = arith.mulf %115, %117 : vector<8x512xf32>
    %c8_115 = arith.constant 8 : index
    %c0_116 = arith.constant 0 : index
    %119 = vector.load %arg8[%c8_115, %c0_116] : memref<72x512xf32, #tpu.memory_space<vmem>>, vector<8x512xf32>
    tpu.vector_store %arg8[%c8_115, %c0_116], %118 {strides = array<i32>} : memref<72x512xf32, #tpu.memory_space<vmem>>, vector<8x512xf32>,
    %c15_i32_117 = arith.constant 15 : i32
    %120 = tpu.dynamic_rotate %105 by %c15_i32_117 dim 1 : vector<8x512xf32>, i32 -> vector<8x512xf32>
    %c2_118 = arith.constant 2 : index
    %c0_119 = arith.constant 0 : index
    %c0_120 = arith.constant 0 : index
    %121 = vector.load %arg6[%c2_118, %c0_119, %c0_120] : memref<9x8x512xf32, #tpu.memory_space<vmem>>, vector<1x8x512xf32>
    %122 = vector.shape_cast %121 : vector<1x8x512xf32> to vector<8x512xf32>
    %123 = arith.mulf %120, %122 : vector<8x512xf32>
    %c16_121 = arith.constant 16 : index
    %c0_122 = arith.constant 0 : index
    %124 = vector.load %arg8[%c16_121, %c0_122] : memref<72x512xf32, #tpu.memory_space<vmem>>, vector<8x512xf32>
    tpu.vector_store %arg8[%c16_121, %c0_122], %123 {strides = array<i32>} : memref<72x512xf32, #tpu.memory_space<vmem>>, vector<8x512xf32>,
    %c1_i32_123 = arith.constant 1 : i32
    %125 = tpu.dynamic_rotate %105 by %c1_i32_123 dim 1 : vector<8x512xf32>, i32 -> vector<8x512xf32>
    %c3_124 = arith.constant 3 : index
    %c0_125 = arith.constant 0 : index
    %c0_126 = arith.constant 0 : index
    %126 = vector.load %arg6[%c3_124, %c0_125, %c0_126] : memref<9x8x512xf32, #tpu.memory_space<vmem>>, vector<1x8x512xf32>
    %127 = vector.shape_cast %126 : vector<1x8x512xf32> to vector<8x512xf32>
    %128 = arith.mulf %125, %127 : vector<8x512xf32>
    %c24_127 = arith.constant 24 : index
    %c0_128 = arith.constant 0 : index
    %129 = vector.load %arg8[%c24_127, %c0_128] : memref<72x512xf32, #tpu.memory_space<vmem>>, vector<8x512xf32>
    tpu.vector_store %arg8[%c24_127, %c0_128], %128 {strides = array<i32>} : memref<72x512xf32, #tpu.memory_space<vmem>>, vector<8x512xf32>,
    %c32_129 = arith.constant 32 : index
    %c0_130 = arith.constant 0 : index
    %130 = vector.load %arg8[%c32_129, %c0_130] : memref<72x512xf32, #tpu.memory_space<vmem>>, vector<8x512xf32>
    tpu.vector_store %arg8[%c32_129, %c0_130], %105 {strides = array<i32>} : memref<72x512xf32, #tpu.memory_space<vmem>>, vector<8x512xf32>,
    %c511_i32_131 = arith.constant 511 : i32
    %131 = tpu.dynamic_rotate %105 by %c511_i32_131 dim 1 : vector<8x512xf32>, i32 -> vector<8x512xf32>
    %c5_132 = arith.constant 5 : index
    %c0_133 = arith.constant 0 : index
    %c0_134 = arith.constant 0 : index
    %132 = vector.load %arg6[%c5_132, %c0_133, %c0_134] : memref<9x8x512xf32, #tpu.memory_space<vmem>>, vector<1x8x512xf32>
    %133 = vector.shape_cast %132 : vector<1x8x512xf32> to vector<8x512xf32>
    %134 = arith.mulf %131, %133 : vector<8x512xf32>
    %c40_135 = arith.constant 40 : index
    %c0_136 = arith.constant 0 : index
    %135 = vector.load %arg8[%c40_135, %c0_136] : memref<72x512xf32, #tpu.memory_space<vmem>>, vector<8x512xf32>
    tpu.vector_store %arg8[%c40_135, %c0_136], %134 {strides = array<i32>} : memref<72x512xf32, #tpu.memory_space<vmem>>, vector<8x512xf32>,
    %c497_i32_137 = arith.constant 497 : i32
    %136 = tpu.dynamic_rotate %105 by %c497_i32_137 dim 1 : vector<8x512xf32>, i32 -> vector<8x512xf32>
    %c6_138 = arith.constant 6 : index
    %c0_139 = arith.constant 0 : index
    %c0_140 = arith.constant 0 : index
    %137 = vector.load %arg6[%c6_138, %c0_139, %c0_140] : memref<9x8x512xf32, #tpu.memory_space<vmem>>, vector<1x8x512xf32>
    %138 = vector.shape_cast %137 : vector<1x8x512xf32> to vector<8x512xf32>
    %139 = arith.mulf %136, %138 : vector<8x512xf32>
    %c48_141 = arith.constant 48 : index
    %c0_142 = arith.constant 0 : index
    %140 = vector.load %arg8[%c48_141, %c0_142] : memref<72x512xf32, #tpu.memory_space<vmem>>, vector<8x512xf32>
    tpu.vector_store %arg8[%c48_141, %c0_142], %139 {strides = array<i32>} : memref<72x512xf32, #tpu.memory_space<vmem>>, vector<8x512xf32>,
    %c496_i32_143 = arith.constant 496 : i32
    %141 = tpu.dynamic_rotate %105 by %c496_i32_143 dim 1 : vector<8x512xf32>, i32 -> vector<8x512xf32>
    %c7_144 = arith.constant 7 : index
    %c0_145 = arith.constant 0 : index
    %c0_146 = arith.constant 0 : index
    %142 = vector.load %arg6[%c7_144, %c0_145, %c0_146] : memref<9x8x512xf32, #tpu.memory_space<vmem>>, vector<1x8x512xf32>
    %143 = vector.shape_cast %142 : vector<1x8x512xf32> to vector<8x512xf32>
    %144 = arith.mulf %141, %143 : vector<8x512xf32>
    %c56_147 = arith.constant 56 : index
    %c0_148 = arith.constant 0 : index
    %145 = vector.load %arg8[%c56_147, %c0_148] : memref<72x512xf32, #tpu.memory_space<vmem>>, vector<8x512xf32>
    tpu.vector_store %arg8[%c56_147, %c0_148], %144 {strides = array<i32>} : memref<72x512xf32, #tpu.memory_space<vmem>>, vector<8x512xf32>,
    %c495_i32_149 = arith.constant 495 : i32
    %146 = tpu.dynamic_rotate %105 by %c495_i32_149 dim 1 : vector<8x512xf32>, i32 -> vector<8x512xf32>
    %c8_150 = arith.constant 8 : index
    %c0_151 = arith.constant 0 : index
    %c0_152 = arith.constant 0 : index
    %147 = vector.load %arg6[%c8_150, %c0_151, %c0_152] : memref<9x8x512xf32, #tpu.memory_space<vmem>>, vector<1x8x512xf32>
    %148 = vector.shape_cast %147 : vector<1x8x512xf32> to vector<8x512xf32>
    %149 = arith.mulf %146, %148 : vector<8x512xf32>
    %c64_153 = arith.constant 64 : index
    %c0_154 = arith.constant 0 : index
    %150 = vector.load %arg8[%c64_153, %c0_154] : memref<72x512xf32, #tpu.memory_space<vmem>>, vector<8x512xf32>
    tpu.vector_store %arg8[%c64_153, %c0_154], %149 {strides = array<i32>} : memref<72x512xf32, #tpu.memory_space<vmem>>, vector<8x512xf32>,
    %c0_155 = arith.constant 0 : index
    %c0_156 = arith.constant 0 : index
    %151 = vector.load %arg8[%c0_155, %c0_156] : memref<72x512xf32, #tpu.memory_space<vmem>>, vector<72x512xf32>
    %cst_157 = arith.constant dense<0.000000e+00> : vector<8x512xf32>
    %152 = tpu.matmul %107, %151, %cst_157 {dimension_numbers = #tpu.dot_dimension_numbers<[1], [0], [0], [1], [0, 0, 1, 1], [], []>} : vector<8x72xf32>, vector<72x512xf32>, vector<8x512xf32> -> vector<8x512xf32>
    %153 = vector.broadcast %109 : vector<8x1xf32> to vector<8x512xf32>
    %154 = arith.addf %152, %153 : vector<8x512xf32>
    %cst_158 = arith.constant 0.000000e+00 : f32
    %155 = vector.broadcast %cst_158 : f32 to vector<8x512xf32>
    %156 = arith.maximumf %154, %155 : vector<8x512xf32>
    %c1_159 = arith.constant 1 : index
    %c0_160 = arith.constant 0 : index
    %c0_161 = arith.constant 0 : index
    %157 = vector.load %arg4[%c1_159, %c0_160, %c0_161] : memref<2x8x72xf32, #tpu.memory_space<vmem>>, vector<1x8x72xf32>
    %158 = vector.shape_cast %157 : vector<1x8x72xf32> to vector<8x72xf32>
    %c1_162 = arith.constant 1 : index
    %c0_163 = arith.constant 0 : index
    %c0_164 = arith.constant 0 : index
    %159 = vector.load %arg5[%c1_162, %c0_163, %c0_164] : memref<2x8x1xf32, #tpu.memory_space<vmem>>, vector<1x8x1xf32>
    %160 = vector.shape_cast %159 : vector<1x8x1xf32> to vector<8x1xf32>
    %c17_i32_165 = arith.constant 17 : i32
    %161 = tpu.dynamic_rotate %156 by %c17_i32_165 dim 1 : vector<8x512xf32>, i32 -> vector<8x512xf32>
    %c0_166 = arith.constant 0 : index
    %c0_167 = arith.constant 0 : index
    %c0_168 = arith.constant 0 : index
    %162 = vector.load %arg6[%c0_166, %c0_167, %c0_168] : memref<9x8x512xf32, #tpu.memory_space<vmem>>, vector<1x8x512xf32>
    %163 = vector.shape_cast %162 : vector<1x8x512xf32> to vector<8x512xf32>
    %164 = arith.mulf %161, %163 : vector<8x512xf32>
    %c0_169 = arith.constant 0 : index
    %c0_170 = arith.constant 0 : index
    %165 = vector.load %arg8[%c0_169, %c0_170] : memref<72x512xf32, #tpu.memory_space<vmem>>, vector<8x512xf32>
    tpu.vector_store %arg8[%c0_169, %c0_170], %164 {strides = array<i32>} : memref<72x512xf32, #tpu.memory_space<vmem>>, vector<8x512xf32>,
    %c16_i32_171 = arith.constant 16 : i32
    %166 = tpu.dynamic_rotate %156 by %c16_i32_171 dim 1 : vector<8x512xf32>, i32 -> vector<8x512xf32>
    %c1_172 = arith.constant 1 : index
    %c0_173 = arith.constant 0 : index
    %c0_174 = arith.constant 0 : index
    %167 = vector.load %arg6[%c1_172, %c0_173, %c0_174] : memref<9x8x512xf32, #tpu.memory_space<vmem>>, vector<1x8x512xf32>
    %168 = vector.shape_cast %167 : vector<1x8x512xf32> to vector<8x512xf32>
    %169 = arith.mulf %166, %168 : vector<8x512xf32>
    %c8_175 = arith.constant 8 : index
    %c0_176 = arith.constant 0 : index
    %170 = vector.load %arg8[%c8_175, %c0_176] : memref<72x512xf32, #tpu.memory_space<vmem>>, vector<8x512xf32>
    tpu.vector_store %arg8[%c8_175, %c0_176], %169 {strides = array<i32>} : memref<72x512xf32, #tpu.memory_space<vmem>>, vector<8x512xf32>,
    %c15_i32_177 = arith.constant 15 : i32
    %171 = tpu.dynamic_rotate %156 by %c15_i32_177 dim 1 : vector<8x512xf32>, i32 -> vector<8x512xf32>
    %c2_178 = arith.constant 2 : index
    %c0_179 = arith.constant 0 : index
    %c0_180 = arith.constant 0 : index
    %172 = vector.load %arg6[%c2_178, %c0_179, %c0_180] : memref<9x8x512xf32, #tpu.memory_space<vmem>>, vector<1x8x512xf32>
    %173 = vector.shape_cast %172 : vector<1x8x512xf32> to vector<8x512xf32>
    %174 = arith.mulf %171, %173 : vector<8x512xf32>
    %c16_181 = arith.constant 16 : index
    %c0_182 = arith.constant 0 : index
    %175 = vector.load %arg8[%c16_181, %c0_182] : memref<72x512xf32, #tpu.memory_space<vmem>>, vector<8x512xf32>
    tpu.vector_store %arg8[%c16_181, %c0_182], %174 {strides = array<i32>} : memref<72x512xf32, #tpu.memory_space<vmem>>, vector<8x512xf32>,
    %c1_i32_183 = arith.constant 1 : i32
    %176 = tpu.dynamic_rotate %156 by %c1_i32_183 dim 1 : vector<8x512xf32>, i32 -> vector<8x512xf32>
    %c3_184 = arith.constant 3 : index
    %c0_185 = arith.constant 0 : index
    %c0_186 = arith.constant 0 : index
    %177 = vector.load %arg6[%c3_184, %c0_185, %c0_186] : memref<9x8x512xf32, #tpu.memory_space<vmem>>, vector<1x8x512xf32>
    %178 = vector.shape_cast %177 : vector<1x8x512xf32> to vector<8x512xf32>
    %179 = arith.mulf %176, %178 : vector<8x512xf32>
    %c24_187 = arith.constant 24 : index
    %c0_188 = arith.constant 0 : index
    %180 = vector.load %arg8[%c24_187, %c0_188] : memref<72x512xf32, #tpu.memory_space<vmem>>, vector<8x512xf32>
    tpu.vector_store %arg8[%c24_187, %c0_188], %179 {strides = array<i32>} : memref<72x512xf32, #tpu.memory_space<vmem>>, vector<8x512xf32>,
    %c32_189 = arith.constant 32 : index
    %c0_190 = arith.constant 0 : index
    %181 = vector.load %arg8[%c32_189, %c0_190] : memref<72x512xf32, #tpu.memory_space<vmem>>, vector<8x512xf32>
    tpu.vector_store %arg8[%c32_189, %c0_190], %156 {strides = array<i32>} : memref<72x512xf32, #tpu.memory_space<vmem>>, vector<8x512xf32>,
    %c511_i32_191 = arith.constant 511 : i32
    %182 = tpu.dynamic_rotate %156 by %c511_i32_191 dim 1 : vector<8x512xf32>, i32 -> vector<8x512xf32>
    %c5_192 = arith.constant 5 : index
    %c0_193 = arith.constant 0 : index
    %c0_194 = arith.constant 0 : index
    %183 = vector.load %arg6[%c5_192, %c0_193, %c0_194] : memref<9x8x512xf32, #tpu.memory_space<vmem>>, vector<1x8x512xf32>
    %184 = vector.shape_cast %183 : vector<1x8x512xf32> to vector<8x512xf32>
    %185 = arith.mulf %182, %184 : vector<8x512xf32>
    %c40_195 = arith.constant 40 : index
    %c0_196 = arith.constant 0 : index
    %186 = vector.load %arg8[%c40_195, %c0_196] : memref<72x512xf32, #tpu.memory_space<vmem>>, vector<8x512xf32>
    tpu.vector_store %arg8[%c40_195, %c0_196], %185 {strides = array<i32>} : memref<72x512xf32, #tpu.memory_space<vmem>>, vector<8x512xf32>,
    %c497_i32_197 = arith.constant 497 : i32
    %187 = tpu.dynamic_rotate %156 by %c497_i32_197 dim 1 : vector<8x512xf32>, i32 -> vector<8x512xf32>
    %c6_198 = arith.constant 6 : index
    %c0_199 = arith.constant 0 : index
    %c0_200 = arith.constant 0 : index
    %188 = vector.load %arg6[%c6_198, %c0_199, %c0_200] : memref<9x8x512xf32, #tpu.memory_space<vmem>>, vector<1x8x512xf32>
    %189 = vector.shape_cast %188 : vector<1x8x512xf32> to vector<8x512xf32>
    %190 = arith.mulf %187, %189 : vector<8x512xf32>
    %c48_201 = arith.constant 48 : index
    %c0_202 = arith.constant 0 : index
    %191 = vector.load %arg8[%c48_201, %c0_202] : memref<72x512xf32, #tpu.memory_space<vmem>>, vector<8x512xf32>
    tpu.vector_store %arg8[%c48_201, %c0_202], %190 {strides = array<i32>} : memref<72x512xf32, #tpu.memory_space<vmem>>, vector<8x512xf32>,
    %c496_i32_203 = arith.constant 496 : i32
    %192 = tpu.dynamic_rotate %156 by %c496_i32_203 dim 1 : vector<8x512xf32>, i32 -> vector<8x512xf32>
    %c7_204 = arith.constant 7 : index
    %c0_205 = arith.constant 0 : index
    %c0_206 = arith.constant 0 : index
    %193 = vector.load %arg6[%c7_204, %c0_205, %c0_206] : memref<9x8x512xf32, #tpu.memory_space<vmem>>, vector<1x8x512xf32>
    %194 = vector.shape_cast %193 : vector<1x8x512xf32> to vector<8x512xf32>
    %195 = arith.mulf %192, %194 : vector<8x512xf32>
    %c56_207 = arith.constant 56 : index
    %c0_208 = arith.constant 0 : index
    %196 = vector.load %arg8[%c56_207, %c0_208] : memref<72x512xf32, #tpu.memory_space<vmem>>, vector<8x512xf32>
    tpu.vector_store %arg8[%c56_207, %c0_208], %195 {strides = array<i32>} : memref<72x512xf32, #tpu.memory_space<vmem>>, vector<8x512xf32>,
    %c495_i32_209 = arith.constant 495 : i32
    %197 = tpu.dynamic_rotate %156 by %c495_i32_209 dim 1 : vector<8x512xf32>, i32 -> vector<8x512xf32>
    %c8_210 = arith.constant 8 : index
    %c0_211 = arith.constant 0 : index
    %c0_212 = arith.constant 0 : index
    %198 = vector.load %arg6[%c8_210, %c0_211, %c0_212] : memref<9x8x512xf32, #tpu.memory_space<vmem>>, vector<1x8x512xf32>
    %199 = vector.shape_cast %198 : vector<1x8x512xf32> to vector<8x512xf32>
    %200 = arith.mulf %197, %199 : vector<8x512xf32>
    %c64_213 = arith.constant 64 : index
    %c0_214 = arith.constant 0 : index
    %201 = vector.load %arg8[%c64_213, %c0_214] : memref<72x512xf32, #tpu.memory_space<vmem>>, vector<8x512xf32>
    tpu.vector_store %arg8[%c64_213, %c0_214], %200 {strides = array<i32>} : memref<72x512xf32, #tpu.memory_space<vmem>>, vector<8x512xf32>,
    %c0_215 = arith.constant 0 : index
    %c0_216 = arith.constant 0 : index
    %202 = vector.load %arg8[%c0_215, %c0_216] : memref<72x512xf32, #tpu.memory_space<vmem>>, vector<72x512xf32>
    %cst_217 = arith.constant dense<0.000000e+00> : vector<8x512xf32>
    %203 = tpu.matmul %158, %202, %cst_217 {dimension_numbers = #tpu.dot_dimension_numbers<[1], [0], [0], [1], [0, 0, 1, 1], [], []>} : vector<8x72xf32>, vector<72x512xf32>, vector<8x512xf32> -> vector<8x512xf32>
    %204 = vector.broadcast %160 : vector<8x1xf32> to vector<8x512xf32>
    %205 = arith.addf %203, %204 : vector<8x512xf32>
    %206 = arith.addf %103, %205 : vector<8x512xf32>
    %c0_218 = arith.constant 0 : index
    %c0_219 = arith.constant 0 : index
    %207 = vector.load %arg7[%c0_218, %c0_219] : memref<8x512xf32, #tpu.memory_space<vmem>>, vector<8x512xf32>
    tpu.vector_store %arg7[%c0_218, %c0_219], %206 {strides = array<i32>} : memref<8x512xf32, #tpu.memory_space<vmem>>, vector<8x512xf32>,
    return
  }
  func.func @transform_0(%arg0: i32) -> (i32, i32) {
    %c0_i32 = arith.constant 0 : i32
    %c0_i32_0 = arith.constant 0 : i32
    return %c0_i32, %arg0 : i32, i32
  }
  func.func @transform_1(%arg0: i32) -> (i32, i32, i32) {
    %c0_i32 = arith.constant 0 : i32
    %c0_i32_0 = arith.constant 0 : i32
    %c0_i32_1 = arith.constant 0 : i32
    %c0_i32_2 = arith.constant 0 : i32
    return %c0_i32, %c0_i32_0, %c0_i32_1 : i32, i32, i32
  }
  func.func @transform_2(%arg0: i32) -> (i32, i32, i32) {
    %c0_i32 = arith.constant 0 : i32
    %c0_i32_0 = arith.constant 0 : i32
    %c0_i32_1 = arith.constant 0 : i32
    %c0_i32_2 = arith.constant 0 : i32
    return %c0_i32, %c0_i32_0, %c0_i32_1 : i32, i32, i32
  }
  func.func @transform_3(%arg0: i32) -> (i32, i32, i32) {
    %c0_i32 = arith.constant 0 : i32
    %c0_i32_0 = arith.constant 0 : i32
    %c0_i32_1 = arith.constant 0 : i32
    %c0_i32_2 = arith.constant 0 : i32
    return %c0_i32, %c0_i32_0, %c0_i32_1 : i32, i32, i32
  }
  func.func @transform_4(%arg0: i32) -> (i32, i32, i32) {
    %c0_i32 = arith.constant 0 : i32
    %c0_i32_0 = arith.constant 0 : i32
    %c0_i32_1 = arith.constant 0 : i32
    %c0_i32_2 = arith.constant 0 : i32
    return %c0_i32, %c0_i32_0, %c0_i32_1 : i32, i32, i32
  }
  func.func @transform_5(%arg0: i32) -> (i32, i32, i32) {
    %c0_i32 = arith.constant 0 : i32
    %c0_i32_0 = arith.constant 0 : i32
    %c0_i32_1 = arith.constant 0 : i32
    %c0_i32_2 = arith.constant 0 : i32
    return %c0_i32, %c0_i32_0, %c0_i32_1 : i32, i32, i32
  }
  func.func @transform_6(%arg0: i32) -> (i32, i32) {
    %c0_i32 = arith.constant 0 : i32
    %c0_i32_0 = arith.constant 0 : i32
    return %c0_i32, %arg0 : i32, i32
  }
}

</mosaic_0001>

<bundles_post_ra>
// kernel: res_units.1
= control target key start
LH: loop header
LB: loop body
LE: loop exit
PB: predicated region body
PF: predicated region fallthrough
CT: control target
= control target key end

     0   :  { %s1753_s29 = smov 111   ;;  %s1755_s30 = smov 113   ;;  %v1760_v8 = vmov 0.0   ;;  %v1761_v9 = vmov 0   ;;  %v41_v11 = vlaneseq  ;;  %vm287_vm8 = vcmask 588800   ;;  %s2816_s0 = inlined_call_operand.vmem [shape: f32[8,512], index: 0, kind: input, shape index: {}]   ;;  %s2817_s2 = inlined_call_operand.vmem [shape: f32[2,8,1], index: 2, kind: input, shape index: {}]   ;;  %s2818_s5 = inlined_call_operand.vmem [shape: f32[9,8,512], index: 5, kind: input, shape index: {}]   ;;  %s2819_s1 = inlined_call_operand.vmem [shape: f32[2,8,72], index: 1, kind: input, shape index: {}]   ;;  %s2820_s4 = inlined_call_operand.vmem [shape: f32[2,8,1], index: 4, kind: input, shape index: {}]   ;;  %s2821_s3 = inlined_call_operand.vmem [shape: f32[2,8,72], index: 3, kind: input, shape index: {}]   ;;  %s2822_s6 = inlined_call_operand.vmem [shape: f32[8,512], index: 6, kind: output, shape index: {}]  }
   0x1   :  { %v1801_v0 = vld [vmem:[%s2816_s0 + $0x10] sm:$0xff]  ;;  %v1806_v1 = vld [vmem:[%s2816_s0] sm:$0xff]  ;;  %v1811_v2 = vld [vmem:[%s2816_s0 + $0x18] sm:$0xff]  ;;  %s1756_s7 = smov 127   ;;  %s1757_s8 = smov 1   ;;  %355 = vmatprep.mubr.f32.mxu0 %v1760_v8  ;;  %426 = vmatprep.mubr.f32.mxu1 %v1760_v8 }
   0x2   :  { %v1814_v3 = vmax.f32 %v1801_v0, 0.0  ;;  %v1817_v4 = vmax.f32 %v1806_v1, 0.0  ;;  %v1822_v5 = vld [vmem:[%s2816_s0 + $0x8] sm:$0xff]  ;;  %v1829_v6 = vmax.f32 %v1811_v2, 0.0  ;;  %s1754_s0 = smov 112   ;;  %s1758_s9 = smov 15   ;;  %1751 = vset.pattern.permute.xlu0 %v1761_v9  ;;  %1752 = vset.pattern.permute.xlu1 %v1761_v9 }
   0x3   :  { %v1832_v7 = vmax.f32 %v1822_v5, 0.0  ;;  %s1759_s10 = smov 16   ;;  %s1762_s11 = smov 17   ;;  %v32_v10 = vld [vmem:[%s2817_s2] sm:$0xff]  ;;  %v1899_v12 = vand.u32 127, %v41_v11  ;;  %v1905_v15 = vld [vmem:[%s2818_s5 + $0x108] sm:$0xff] }
   0x4   :  { %224 = vrot.lane.b32.xlu1 %v1814_v3, %s1753_s29  ;;  %220 = vrot.lane.b32.xlu0 %v1817_v4, %s1753_s29  ;;  %v1910_v16 = vld [vmem:[%s2818_s5 + $0x118] sm:$0xff]  ;;  %v1915_v17 = vld [vmem:[%s2818_s5 + $0x100] sm:$0xff] }
   0x5   :  { %vm228_vm0 = vcmp.lt.s32.totalorder %v1899_v12, 111  ;;  %v1920_v18 = vld [vmem:[%s2818_s5 + $0x110] sm:$0xff]  ;;  %vm202_vm1 = vcmp.lt.s32.totalorder %v1899_v12, 112  ;;  %v1938_v31 = vld [vmem:[%s2818_s5 + $0xe8] sm:$0xff]  ;;  %v1943_v32 = vld [vmem:[%s2818_s5 + $0xf8] sm:$0xff]  ;;  %vm176_vm2 = vcmp.lt.s32.totalorder %v1899_v12, 113 }
   0x6   :  { %v1948_v33 = vld [vmem:[%s2818_s5 + $0xf0] sm:$0xff]  ;;  %v1955_v37 = vld [vmem:[%s2818_s5 + $0xe0] sm:$0xff]  ;;  %v1971_v47 = vld [vmem:[%s2818_s5 + $0xc8] sm:$0xff]  ;;  %vm150_vm3 = vcmp.lt.s32.totalorder %v1899_v12, 127  ;;  %vm120_vm4 = vcmp.lt.s32.totalorder %v1899_v12, 1  ;;  %vm94_vm5 = vcmp.lt.s32.totalorder %v1899_v12, 15 }
   0x7   :  { %v1976_v48 = vld [vmem:[%s2818_s5 + $0xd8] sm:$0xff]  ;;  %v1981_v49 = vld [vmem:[%s2818_s5 + $0xd0] sm:$0xff]  ;;  %v1988_v53 = vld [vmem:[%s2818_s5 + $0xc0] sm:$0xff]  ;;  %vm68_vm6 = vcmp.lt.s32.totalorder %v1899_v12, 16  ;;  %vm43_vm7 = vcmp.lt.s32.totalorder %v1899_v12, 17 }
   0x8   :  { %226 = vrot.lane.b32.xlu1 %v1829_v6, %s1753_s29  ;;  %222 = vrot.lane.b32.xlu0 %v1832_v7, %s1753_s29  ;;  %v2004_v63 = vld [vmem:[%s2818_s5 + $0xa8] sm:$0xff]  ;;  %v2009_v9 = vld [vmem:[%s2818_s5 + $0xb8] sm:$0xff] }
   0xc   :  { %196 = vrot.lane.b32.xlu1 %v1832_v7, %s1754_s0  ;;  %194 = vrot.lane.b32.xlu0 %v1817_v4, %s1754_s0 }
  0x10   :  { %200 = vrot.lane.b32.xlu1 %v1829_v6, %s1754_s0  ;;  %198 = vrot.lane.b32.xlu0 %v1814_v3, %s1754_s0 }
  0x14   :  { %170 = vrot.lane.b32.xlu1 %v1832_v7, %s1755_s30  ;;  %168 = vrot.lane.b32.xlu0 %v1817_v4, %s1755_s30 }
  0x18   :  { %174 = vrot.lane.b32.xlu1 %v1829_v6, %s1755_s30  ;;  %172 = vrot.lane.b32.xlu0 %v1814_v3, %s1755_s30 }
  0x1c   :  { %144 = vrot.lane.b32.xlu1 %v1832_v7, %s1756_s7  ;;  %142 = vrot.lane.b32.xlu0 %v1817_v4, %s1756_s7 }
  0x20   :  { %148 = vrot.lane.b32.xlu1 %v1829_v6, %s1756_s7  ;;  %146 = vrot.lane.b32.xlu0 %v1814_v3, %s1756_s7 }
  0x24   :  { %114 = vrot.lane.b32.xlu1 %v1832_v7, %s1757_s8  ;;  %112 = vrot.lane.b32.xlu0 %v1817_v4, %s1757_s8 }
  0x28   :  { %118 = vrot.lane.b32.xlu1 %v1829_v6, %s1757_s8  ;;  %116 = vrot.lane.b32.xlu0 %v1814_v3, %s1757_s8 }
  0x2c   :  { %88 = vrot.lane.b32.xlu1 %v1832_v7, %s1758_s9  ;;  %86 = vrot.lane.b32.xlu0 %v1817_v4, %s1758_s9 }
  0x30   :  { %92 = vrot.lane.b32.xlu1 %v1829_v6, %s1758_s9  ;;  %90 = vrot.lane.b32.xlu0 %v1814_v3, %s1758_s9 }
  0x34   :  { %62 = vrot.lane.b32.xlu1 %v1832_v7, %s1759_s10  ;;  %60 = vrot.lane.b32.xlu0 %v1817_v4, %s1759_s10 }
  0x38   :  { %66 = vrot.lane.b32.xlu1 %v1829_v6, %s1759_s10  ;;  %64 = vrot.lane.b32.xlu0 %v1814_v3, %s1759_s10 }
  0x3c   :  { %35 = vrot.lane.b32.xlu1 %v1832_v7, %s1762_s11  ;;  %33 = vrot.lane.b32.xlu0 %v1817_v4, %s1762_s11 }
  0x40   :  { %39 = vrot.lane.b32.xlu1 %v1829_v6, %s1762_s11  ;;  %37 = vrot.lane.b32.xlu0 %v1814_v3, %s1762_s11 }
  0x44   :  { %284 = vperm.xlu0 %1751, %v32_v10   ;;  %v2014_v10 = vld [vmem:[%s2818_s5 + $0xb0] sm:$0xff] }
  0x76   :  { %v225_v13 = vpop.permute.xlu1 %224  ;;  %v221_v14 = vpop.permute.xlu0 %220 }
  0x7a   :  { %v227_v19 = vpop.permute.xlu1 %226  ;;  %v223_v20 = vpop.permute.xlu0 %222 }
  0x7b   :  { %v230_v21 = vsel %vm228_vm0, %v223_v20, %v225_v13  ;;  %v232_v22 = vsel %vm228_vm0, %v227_v19, %v221_v14  ;;  %v231_v23 = vsel %vm228_vm0, %v221_v14, %v223_v20  ;;  %v229_v24 = vsel %vm228_vm0, %v225_v13, %v227_v19  ;;  %v2021_v19 = vld [vmem:[%s2818_s5 + $0xa0] sm:$0xff] }
  0x7c   :  { %v239_v25 = vmul.f32 %v1905_v15, %v230_v21  ;;  %v241_v26 = vmul.f32 %v1910_v16, %v232_v22  ;;  %v238_v27 = vmul.f32 %v1915_v17, %v231_v23  ;;  %v240_v28 = vmul.f32 %v1920_v18, %v229_v24 }
  0x7e   :  { %v197_v29 = vpop.permute.xlu1 %196  ;;  %305 = vmatprep.subr.mxu0 %v239_v25  ;;  %376 = vmatprep.subr.mxu1 %v241_v26  ;;  %v195_v30 = vpop.permute.xlu0 %194 }
  0x7f   :  { %306 = vmatpush1.msra.mxu0 %v238_v27  ;;  %377 = vmatpush1.msra.mxu1 %v240_v28  ;;  %v205_v34 = vsel %vm202_vm1, %v195_v30, %v197_v29  ;;  %v2037_v27 = vld [vmem:[%s2818_s5 + $0x68] sm:$0xff] }
  0x80   :  { %v212_v44 = vmul.f32 %v1955_v37, %v205_v34 }
  0x82   :  { %v201_v35 = vpop.permute.xlu1 %200  ;;  %v199_v36 = vpop.permute.xlu0 %198 }
  0x83   :  { %v206_v38 = vsel %vm202_vm1, %v201_v35, %v195_v30  ;;  %v203_v39 = vsel %vm202_vm1, %v199_v36, %v201_v35  ;;  %v204_v40 = vsel %vm202_vm1, %v197_v29, %v199_v36  ;;  %v2049_v35 = vld [vmem:[%s2818_s5 + $0x60] sm:$0xff]  ;;  %v2054_v36 = vld [vmem:[%s2818_s5 + $0x78] sm:$0xff] }
  0x84   :  { %v213_v41 = vmul.f32 %v1938_v31, %v204_v40  ;;  %v215_v42 = vmul.f32 %v1943_v32, %v206_v38  ;;  %v214_v43 = vmul.f32 %v1948_v33, %v203_v39 }
  0x86   :  { %v171_v45 = vpop.permute.xlu1 %170  ;;  %307 = vmatprep.subr.mxu0 %v213_v41  ;;  %378 = vmatprep.subr.mxu1 %v215_v42  ;;  %v169_v46 = vpop.permute.xlu0 %168 }
  0x87   :  { %308 = vmatpush1.msra.mxu0 %v212_v44  ;;  %379 = vmatpush1.msra.mxu1 %v214_v43  ;;  %v179_v50 = vsel %vm176_vm2, %v169_v46, %v171_v45  ;;  %v2074_v43 = vld [vmem:[%s2818_s5 + $0x48] sm:$0xff] }
  0x88   :  { %v186_v60 = vmul.f32 %v1988_v53, %v179_v50 }
  0x8a   :  { %v175_v51 = vpop.permute.xlu1 %174  ;;  %v173_v52 = vpop.permute.xlu0 %172 }
  0x8b   :  { %v180_v54 = vsel %vm176_vm2, %v175_v51, %v169_v46  ;;  %v177_v55 = vsel %vm176_vm2, %v173_v52, %v175_v51  ;;  %v178_v56 = vsel %vm176_vm2, %v171_v45, %v173_v52  ;;  %v2082_v51 = vld [vmem:[%s2818_s5 + $0x40] sm:$0xff]  ;;  %v2087_v52 = vld [vmem:[%s2818_s5 + $0x58] sm:$0xff] }
  0x8c   :  { %v187_v57 = vmul.f32 %v1971_v47, %v178_v56  ;;  %v189_v58 = vmul.f32 %v1976_v48, %v180_v54  ;;  %v188_v59 = vmul.f32 %v1981_v49, %v177_v55  ;;  %v2092_v54 = vld [vmem:[%s2818_s5 + $0x50] sm:$0xff] }
  0x8e   :  { %v145_v61 = vpop.permute.xlu1 %144  ;;  %309 = vmatprep.subr.mxu0 %v187_v57  ;;  %380 = vmatprep.subr.mxu1 %v189_v58  ;;  %v143_v62 = vpop.permute.xlu0 %142 }
  0x8f   :  { %310 = vmatpush1.msra.mxu0 %v186_v60  ;;  %381 = vmatpush1.msra.mxu1 %v188_v59  ;;  %v153_v11 = vsel %vm150_vm3, %v143_v62, %v145_v61 }
  0x90   :  { %v160_v26 = vmul.f32 %v2021_v19, %v153_v11  ;;  %v2107_v11 = vld [vmem:[%s2818_s5 + $0x28] sm:$0xff] }
  0x92   :  { %v149_v13 = vpop.permute.xlu1 %148  ;;  %v147_v14 = vpop.permute.xlu0 %146 }
  0x93   :  { %v154_v20 = vsel %vm150_vm3, %v149_v13, %v143_v62  ;;  %v151_v21 = vsel %vm150_vm3, %v147_v14, %v149_v13  ;;  %v152_v22 = vsel %vm150_vm3, %v145_v61, %v147_v14 }
  0x94   :  { %v161_v23 = vmul.f32 %v2004_v63, %v152_v22  ;;  %v163_v24 = vmul.f32 %v2009_v9, %v154_v20  ;;  %v162_v25 = vmul.f32 %v2014_v10, %v151_v21  ;;  %v2115_v22 = vld [vmem:[%s2818_s5 + $0x20] sm:$0xff] }
  0x96   :  { %v115_v28 = vpop.permute.xlu1 %114  ;;  %311 = vmatprep.subr.mxu0 %v161_v23  ;;  %382 = vmatprep.subr.mxu1 %v163_v24  ;;  %v113_v29 = vpop.permute.xlu0 %112  ;;  %v2120_v23 = vld [vmem:[%s2818_s5 + $0x38] sm:$0xff]  ;;  %v2125_v24 = vld [vmem:[%s2818_s5 + $0x30] sm:$0xff] }
  0x97   :  { %v123_v30 = vsel %vm120_vm4, %v113_v29, %v115_v28  ;;  %312 = vmatpush1.msra.mxu0 %v160_v26  ;;  %383 = vmatpush1.msra.mxu1 %v162_v25 }
  0x98   :  { %313 = vmatprep.subr.mxu0 %v1832_v7  ;;  %v131_v34 = vmul.f32 %v2037_v27, %v123_v30  ;;  %384 = vmatprep.subr.mxu1 %v1829_v6  ;;  %v2059_v7 = vld [vmem:[%s2818_s5 + $0x70] sm:$0xff] }
  0x99   :  { %314 = vmatpush1.msra.mxu0 %v1817_v4  ;;  %385 = vmatpush1.msra.mxu1 %v1814_v3 }
  0x9a   :  { %v119_v6 = vpop.permute.xlu1 %118  ;;  %315 = vmatprep.subr.mxu0 %v131_v34  ;;  %v117_v4 = vpop.permute.xlu0 %116 }
  0x9b   :  { %v124_v3 = vsel %vm120_vm4, %v119_v6, %v113_v29  ;;  %v121_v38 = vsel %vm120_vm4, %v117_v4, %v119_v6  ;;  %v122_v39 = vsel %vm120_vm4, %v115_v28, %v117_v4 }
  0x9c   :  { %v130_v40 = vmul.f32 %v2049_v35, %v124_v3  ;;  %v133_v41 = vmul.f32 %v2054_v36, %v121_v38  ;;  %v132_v42 = vmul.f32 %v2059_v7, %v122_v39  ;;  %v2140_v3 = vld [vmem:[%s2818_s5 + $0x8] sm:$0xff] }
  0x9e   :  { %v89_v44 = vpop.permute.xlu1 %88  ;;  %316 = vmatpush1.msra.mxu0 %v130_v40  ;;  %386 = vmatprep.subr.mxu1 %v133_v41  ;;  %v87_v45 = vpop.permute.xlu0 %86 }
  0x9f   :  { %v97_v46 = vsel %vm94_vm5, %v87_v45, %v89_v44  ;;  %387 = vmatpush1.msra.mxu1 %v132_v42  ;;  %v2148_v42 = vld [vmem:[%s2818_s5] sm:$0xff] }
  0xa0   :  { %v105_v50 = vmul.f32 %v2074_v43, %v97_v46 }
  0xa2   :  { %v93_v55 = vpop.permute.xlu1 %92  ;;  %317 = vmatprep.subr.mxu0 %v105_v50  ;;  %v91_v56 = vpop.permute.xlu0 %90 }
  0xa3   :  { %v98_v57 = vsel %vm94_vm5, %v93_v55, %v87_v45  ;;  %v95_v58 = vsel %vm94_vm5, %v91_v56, %v93_v55  ;;  %v96_v59 = vsel %vm94_vm5, %v89_v44, %v91_v56  ;;  %v2153_v44 = vld [vmem:[%s2818_s5 + $0x18] sm:$0xff]  ;;  %v2158_v45 = vld [vmem:[%s2818_s5 + $0x10] sm:$0xff] }
  0xa4   :  { %v104_v60 = vmul.f32 %v2082_v51, %v98_v57  ;;  %v107_v61 = vmul.f32 %v2087_v52, %v95_v58  ;;  %v106_v62 = vmul.f32 %v2092_v54, %v96_v59 }
  0xa6   :  { %v63_v13 = vpop.permute.xlu1 %62  ;;  %318 = vmatpush1.msra.mxu0 %v104_v60  ;;  %388 = vmatprep.subr.mxu1 %v107_v61  ;;  %v61_v14 = vpop.permute.xlu0 %60  ;;  %v31_v60 = vld [vmem:[%s2819_s1] sm:$0xff] }
  0xa7   :  { %v71_v20 = vsel %vm68_vm6, %v61_v14, %v63_v13  ;;  %389 = vmatpush1.msra.mxu1 %v106_v62 }
  0xa8   :  { %v79_v21 = vmul.f32 %v2107_v11, %v71_v20 }
  0xaa   :  { %v67_v25 = vpop.permute.xlu1 %66  ;;  %319 = vmatprep.subr.mxu0 %v79_v21  ;;  %v65_v26 = vpop.permute.xlu0 %64 }
  0xab   :  { %v72_v28 = vsel %vm68_vm6, %v67_v25, %v61_v14  ;;  %v69_v29 = vsel %vm68_vm6, %v65_v26, %v67_v25  ;;  %v70_v30 = vsel %vm68_vm6, %v63_v13, %v65_v26 }
  0xac   :  { %v78_v34 = vmul.f32 %v2115_v22, %v72_v28  ;;  %v81_v6 = vmul.f32 %v2120_v23, %v69_v29  ;;  %v80_v4 = vmul.f32 %v2125_v24, %v70_v30 }
  0xae   :  { %v36_v38 = vpop.permute.xlu1 %35  ;;  %320 = vmatpush1.msra.mxu0 %v78_v34  ;;  %390 = vmatprep.subr.mxu1 %v81_v6  ;;  %v34_v39 = vpop.permute.xlu0 %33 }
  0xaf   :  { %v46_v40 = vsel %vm43_vm7, %v34_v39, %v36_v38  ;;  %391 = vmatpush1.msra.mxu1 %v80_v4 }
  0xb0   :  { %v53_v41 = vmul.f32 %v2140_v3, %v46_v40 }
  0xb2   :  { %v40_v46 = vpop.permute.xlu1 %39  ;;  %321 = vmatprep.subr.mxu0 %v53_v41  ;;  %v38_v50 = vpop.permute.xlu0 %37 }
  0xb3   :  { %v47_v55 = vsel %vm43_vm7, %v40_v46, %v34_v39  ;;  %v44_v56 = vsel %vm43_vm7, %v38_v50, %v40_v46  ;;  %v45_v57 = vsel %vm43_vm7, %v36_v38, %v38_v50  ;;  %v438_v38 = vld [vmem:[%s2820_s4] sm:$0xff] }
  0xb4   :  { %v52_v58 = vmul.f32 %v2148_v42, %v47_v55  ;;  %v55_v59 = vmul.f32 %v2153_v44, %v44_v56  ;;  %v54_v61 = vmul.f32 %v2158_v45, %v45_v57 }
  0xb6   :  { %322 = vmatpush1.msra.mxu0 %v52_v58  ;;  %392 = vmatprep.subr.mxu1 %v55_v59 }
  0xb7   :  { %1645 = vmatmul.mubr.msk.f32.vlgmr.msra.gmra.mxu0 %vm287_vm8, %v31_v60  ;;  %393 = vmatpush1.msra.mxu1 %v54_v61 }
  0xb8   :  { %1646 = vmatmul.mubr.msk.f32.vlgmr.msra.gmra.mxu1 %vm287_vm8, %v31_v60  ;;  %743 = vmatprep.mubr.f32.mxu0 %v1760_v8 }
  0xb9   :  { %814 = vmatprep.mubr.f32.mxu1 %v1760_v8 }
  0xbf   :  { %v285_v62 = vpop.permute.xlu0 %284 }
 0x177   :  { %v357_v13 = vpop.f32.mrf.mxu0 }
 0x178   :  { %v358_v14 = vadd.f32 %v357_v13, %v285_v62  ;;  %v428_v20 = vpop.f32.mrf.mxu1 }
 0x179   :  { %v429_v21 = vadd.f32 %v428_v20, %v285_v62  ;;  %v359_v25 = vpop.f32.mrf.mxu0 }
 0x17a   :  { %v2176_v26 = vmax.f32 %v358_v14, 0.0  ;;  %v360_v28 = vadd.f32 %v359_v25, %v285_v62  ;;  %v430_v30 = vpop.f32.mrf.mxu1 }
 0x17b   :  { %v2178_v29 = vmax.f32 %v429_v21, 0.0  ;;  %v431_v6 = vadd.f32 %v430_v30, %v285_v62 }
 0x17c   :  { %611 = vrot.lane.b32.xlu1 %v2176_v26, %s1753_s29  ;;  %v2184_v34 = vmax.f32 %v360_v28, 0.0 }
 0x17d   :  { %615 = vrot.lane.b32.xlu0 %v2178_v29, %s1753_s29  ;;  %v2190_v4 = vmax.f32 %v431_v6, 0.0 }
 0x180   :  { %613 = vrot.lane.b32.xlu1 %v2184_v34, %s1753_s29 }
 0x181   :  { %587 = vrot.lane.b32.xlu0 %v2176_v26, %s1754_s0 }
 0x184   :  { %617 = vrot.lane.b32.xlu1 %v2190_v4, %s1753_s29 }
 0x185   :  { %591 = vrot.lane.b32.xlu0 %v2178_v29, %s1754_s0 }
 0x188   :  { %589 = vrot.lane.b32.xlu1 %v2184_v34, %s1754_s0 }
 0x189   :  { %563 = vrot.lane.b32.xlu0 %v2176_v26, %s1755_s30 }
 0x18c   :  { %593 = vrot.lane.b32.xlu1 %v2190_v4, %s1754_s0 }
 0x18d   :  { %567 = vrot.lane.b32.xlu0 %v2178_v29, %s1755_s30 }
 0x190   :  { %565 = vrot.lane.b32.xlu1 %v2184_v34, %s1755_s30 }
 0x191   :  { %539 = vrot.lane.b32.xlu0 %v2176_v26, %s1756_s7 }
 0x194   :  { %569 = vrot.lane.b32.xlu1 %v2190_v4, %s1755_s30 }
 0x195   :  { %543 = vrot.lane.b32.xlu0 %v2178_v29, %s1756_s7 }
 0x198   :  { %541 = vrot.lane.b32.xlu1 %v2184_v34, %s1756_s7 }
 0x199   :  { %511 = vrot.lane.b32.xlu0 %v2176_v26, %s1757_s8 }
 0x19c   :  { %545 = vrot.lane.b32.xlu1 %v2190_v4, %s1756_s7 }
 0x19d   :  { %515 = vrot.lane.b32.xlu0 %v2178_v29, %s1757_s8 }
 0x1a0   :  { %513 = vrot.lane.b32.xlu1 %v2184_v34, %s1757_s8 }
 0x1a1   :  { %487 = vrot.lane.b32.xlu0 %v2176_v26, %s1758_s9 }
 0x1a4   :  { %517 = vrot.lane.b32.xlu1 %v2190_v4, %s1757_s8 }
 0x1a5   :  { %491 = vrot.lane.b32.xlu0 %v2178_v29, %s1758_s9 }
 0x1a8   :  { %489 = vrot.lane.b32.xlu1 %v2184_v34, %s1758_s9 }
 0x1a9   :  { %463 = vrot.lane.b32.xlu0 %v2176_v26, %s1759_s10 }
 0x1ac   :  { %493 = vrot.lane.b32.xlu1 %v2190_v4, %s1758_s9 }
 0x1ad   :  { %467 = vrot.lane.b32.xlu0 %v2178_v29, %s1759_s10 }
 0x1b0   :  { %465 = vrot.lane.b32.xlu1 %v2184_v34, %s1759_s10 }
 0x1b1   :  { %439 = vrot.lane.b32.xlu0 %v2176_v26, %s1762_s11 }
 0x1b4   :  { %469 = vrot.lane.b32.xlu1 %v2190_v4, %s1759_s10 }
 0x1b5   :  { %443 = vrot.lane.b32.xlu0 %v2178_v29, %s1762_s11 }
 0x1b8   :  { %441 = vrot.lane.b32.xlu1 %v2184_v34, %s1762_s11 }
 0x1b9   :  { %673 = vperm.xlu0 %1751, %v438_v38  }
 0x1bc   :  { %445 = vrot.lane.b32.xlu1 %v2190_v4, %s1762_s11 }
 0x1ee   :  { %v612_v39 = vpop.permute.xlu1 %611 }
 0x1ef   :  { %v616_v40 = vpop.permute.xlu0 %615 }
 0x1f2   :  { %v614_v41 = vpop.permute.xlu1 %613 }
 0x1f3   :  { %v620_v46 = vsel %vm228_vm0, %v614_v41, %v616_v40  ;;  %v621_v50 = vsel %vm228_vm0, %v612_v39, %v614_v41  ;;  %v588_v55 = vpop.permute.xlu0 %587 }
 0x1f4   :  { %v627_v56 = vmul.f32 %v1915_v17, %v621_v50  ;;  %v628_v57 = vmul.f32 %v1905_v15, %v620_v46 }
 0x1f6   :  { %693 = vmatprep.subr.mxu0 %v628_v57  ;;  %v618_v58 = vpop.permute.xlu1 %617 }
 0x1f7   :  { %v619_v59 = vsel %vm228_vm0, %v616_v40, %v618_v58  ;;  %v622_v60 = vsel %vm228_vm0, %v618_v58, %v612_v39  ;;  %v592_v61 = vpop.permute.xlu0 %591  ;;  %694 = vmatpush1.msra.mxu0 %v627_v56 }
 0x1f8   :  { %v629_v62 = vmul.f32 %v1920_v18, %v619_v59  ;;  %v630_v13 = vmul.f32 %v1910_v16, %v622_v60 }
 0x1fa   :  { %764 = vmatprep.subr.mxu1 %v630_v13  ;;  %v590_v14 = vpop.permute.xlu1 %589 }
 0x1fb   :  { %v596_v20 = vsel %vm202_vm1, %v590_v14, %v592_v61  ;;  %v597_v21 = vsel %vm202_vm1, %v588_v55, %v590_v14  ;;  %v564_v25 = vpop.permute.xlu0 %563  ;;  %765 = vmatpush1.msra.mxu1 %v629_v62 }
 0x1fc   :  { %v603_v28 = vmul.f32 %v1955_v37, %v597_v21  ;;  %v604_v30 = vmul.f32 %v1938_v31, %v596_v20 }
 0x1fe   :  { %695 = vmatprep.subr.mxu0 %v604_v30  ;;  %v594_v6 = vpop.permute.xlu1 %593 }
 0x1ff   :  { %v595_v38 = vsel %vm202_vm1, %v592_v61, %v594_v6  ;;  %v598_v39 = vsel %vm202_vm1, %v594_v6, %v588_v55  ;;  %v568_v40 = vpop.permute.xlu0 %567  ;;  %696 = vmatpush1.msra.mxu0 %v603_v28 }
 0x200   :  { %v605_v41 = vmul.f32 %v1948_v33, %v595_v38  ;;  %v606_v46 = vmul.f32 %v1943_v32, %v598_v39 }
 0x202   :  { %766 = vmatprep.subr.mxu1 %v606_v46  ;;  %v566_v50 = vpop.permute.xlu1 %565 }
 0x203   :  { %v572_v56 = vsel %vm176_vm2, %v566_v50, %v568_v40  ;;  %v573_v57 = vsel %vm176_vm2, %v564_v25, %v566_v50  ;;  %v540_v58 = vpop.permute.xlu0 %539  ;;  %767 = vmatpush1.msra.mxu1 %v605_v41 }
 0x204   :  { %v579_v59 = vmul.f32 %v1988_v53, %v573_v57  ;;  %v580_v55 = vmul.f32 %v1971_v47, %v572_v56 }
 0x206   :  { %697 = vmatprep.subr.mxu0 %v580_v55  ;;  %v570_v60 = vpop.permute.xlu1 %569 }
 0x207   :  { %v571_v61 = vsel %vm176_vm2, %v568_v40, %v570_v60  ;;  %v574_v62 = vsel %vm176_vm2, %v570_v60, %v564_v25  ;;  %v544_v13 = vpop.permute.xlu0 %543  ;;  %698 = vmatpush1.msra.mxu0 %v579_v59 }
 0x208   :  { %v581_v14 = vmul.f32 %v1981_v49, %v571_v61  ;;  %v582_v20 = vmul.f32 %v1976_v48, %v574_v62 }
 0x20a   :  { %768 = vmatprep.subr.mxu1 %v582_v20  ;;  %v542_v21 = vpop.permute.xlu1 %541 }
 0x20b   :  { %v548_v28 = vsel %vm150_vm3, %v542_v21, %v544_v13  ;;  %v549_v30 = vsel %vm150_vm3, %v540_v58, %v542_v21  ;;  %v512_v6 = vpop.permute.xlu0 %511  ;;  %769 = vmatpush1.msra.mxu1 %v581_v14 }
 0x20c   :  { %v555_v38 = vmul.f32 %v2021_v19, %v549_v30  ;;  %v556_v25 = vmul.f32 %v2004_v63, %v548_v28 }
 0x20e   :  { %699 = vmatprep.subr.mxu0 %v556_v25  ;;  %v546_v39 = vpop.permute.xlu1 %545 }
 0x20f   :  { %v547_v40 = vsel %vm150_vm3, %v544_v13, %v546_v39  ;;  %v550_v41 = vsel %vm150_vm3, %v546_v39, %v540_v58  ;;  %v516_v46 = vpop.permute.xlu0 %515  ;;  %700 = vmatpush1.msra.mxu0 %v555_v38 }
 0x210   :  { %v557_v50 = vmul.f32 %v2014_v10, %v547_v40  ;;  %v558_v56 = vmul.f32 %v2009_v9, %v550_v41  ;;  %701 = vmatprep.subr.mxu0 %v2184_v34 }
 0x211   :  { %702 = vmatpush1.msra.mxu0 %v2176_v26 }
 0x212   :  { %770 = vmatprep.subr.mxu1 %v558_v56  ;;  %v514_v57 = vpop.permute.xlu1 %513 }
 0x213   :  { %v521_v59 = vsel %vm120_vm4, %v512_v6, %v514_v57  ;;  %v488_v55 = vpop.permute.xlu0 %487  ;;  %771 = vmatpush1.msra.mxu1 %v557_v50  ;;  %v520_v58 = vsel %vm120_vm4, %v514_v57, %v516_v46 }
 0x214   :  { %v528_v60 = vmul.f32 %v2037_v27, %v521_v59  ;;  %772 = vmatprep.subr.mxu1 %v2190_v4  ;;  %v529_v4 = vmul.f32 %v2059_v7, %v520_v58 }
 0x215   :  { %773 = vmatpush1.msra.mxu1 %v2178_v29 }
 0x216   :  { %703 = vmatprep.subr.mxu0 %v528_v60  ;;  %v518_v34 = vpop.permute.xlu1 %517 }
 0x217   :  { %v519_v26 = vsel %vm120_vm4, %v516_v46, %v518_v34  ;;  %v522_v61 = vsel %vm120_vm4, %v518_v34, %v512_v6  ;;  %v492_v62 = vpop.permute.xlu0 %491 }
 0x218   :  { %v527_v13 = vmul.f32 %v2049_v35, %v522_v61  ;;  %v530_v14 = vmul.f32 %v2054_v36, %v519_v26 }
 0x21a   :  { %704 = vmatpush1.msra.mxu0 %v527_v13  ;;  %774 = vmatprep.subr.mxu1 %v530_v14  ;;  %v490_v29 = vpop.permute.xlu1 %489 }
 0x21b   :  { %v497_v20 = vsel %vm94_vm5, %v488_v55, %v490_v29  ;;  %v464_v21 = vpop.permute.xlu0 %463  ;;  %775 = vmatpush1.msra.mxu1 %v529_v4  ;;  %v496_v30 = vsel %vm94_vm5, %v490_v29, %v492_v62 }
 0x21c   :  { %v504_v28 = vmul.f32 %v2074_v43, %v497_v20  ;;  %v505_v41 = vmul.f32 %v2092_v54, %v496_v30 }
 0x21e   :  { %705 = vmatprep.subr.mxu0 %v504_v28  ;;  %v494_v6 = vpop.permute.xlu1 %493 }
 0x21f   :  { %v495_v38 = vsel %vm94_vm5, %v492_v62, %v494_v6  ;;  %v498_v25 = vsel %vm94_vm5, %v494_v6, %v488_v55  ;;  %v468_v46 = vpop.permute.xlu0 %467 }
 0x220   :  { %v503_v39 = vmul.f32 %v2082_v51, %v498_v25  ;;  %v506_v40 = vmul.f32 %v2087_v52, %v495_v38  ;;  %v437_v25 = vld [vmem:[%s2821_s3] sm:$0xff] }
 0x222   :  { %706 = vmatpush1.msra.mxu0 %v503_v39  ;;  %776 = vmatprep.subr.mxu1 %v506_v40  ;;  %v466_v50 = vpop.permute.xlu1 %465 }
 0x223   :  { %v473_v56 = vsel %vm68_vm6, %v464_v21, %v466_v50  ;;  %777 = vmatpush1.msra.mxu1 %v505_v41  ;;  %v472_v59 = vsel %vm68_vm6, %v466_v50, %v468_v46  ;;  %v440_v60 = vpop.permute.xlu0 %439 }
 0x224   :  { %v480_v57 = vmul.f32 %v2107_v11, %v473_v56  ;;  %v481_v62 = vmul.f32 %v2125_v24, %v472_v59 }
 0x226   :  { %707 = vmatprep.subr.mxu0 %v480_v57  ;;  %v470_v55 = vpop.permute.xlu1 %469 }
 0x227   :  { %v471_v58 = vsel %vm68_vm6, %v468_v46, %v470_v55  ;;  %v474_v34 = vsel %vm68_vm6, %v470_v55, %v464_v21  ;;  %v444_v29 = vpop.permute.xlu0 %443 }
 0x228   :  { %v479_v26 = vmul.f32 %v2115_v22, %v474_v34  ;;  %v482_v61 = vmul.f32 %v2120_v23, %v471_v58 }
 0x22a   :  { %708 = vmatpush1.msra.mxu0 %v479_v26  ;;  %778 = vmatprep.subr.mxu1 %v482_v61  ;;  %v442_v13 = vpop.permute.xlu1 %441 }
 0x22b   :  { %v449_v14 = vsel %vm43_vm7, %v440_v60, %v442_v13  ;;  %779 = vmatpush1.msra.mxu1 %v481_v62  ;;  %v448_v20 = vsel %vm43_vm7, %v442_v13, %v444_v29 }
 0x22c   :  { %v456_v4 = vmul.f32 %v449_v14, %v2140_v3  ;;  %v457_v39 = vmul.f32 %v448_v20, %v2158_v45 }
 0x22e   :  { %709 = vmatprep.subr.mxu0 %v456_v4  ;;  %v446_v21 = vpop.permute.xlu1 %445 }
 0x22f   :  { %v447_v28 = vsel %vm43_vm7, %v444_v29, %v446_v21  ;;  %v450_v30 = vsel %vm43_vm7, %v446_v21, %v440_v60 }
 0x230   :  { %v455_v6 = vmul.f32 %v450_v30, %v2148_v42  ;;  %v458_v38 = vmul.f32 %v447_v28, %v2153_v44 }
 0x232   :  { %710 = vmatpush1.msra.mxu0 %v455_v6  ;;  %780 = vmatprep.subr.mxu1 %v458_v38 }
 0x233   :  { %1675 = vmatmul.mubr.msk.f32.vlgmr.msra.gmra.mxu0 %vm287_vm8, %v437_v25  ;;  %781 = vmatpush1.msra.mxu1 %v457_v39 }
 0x234   :  { %1676 = vmatmul.mubr.msk.f32.vlgmr.msra.gmra.mxu1 %vm287_vm8, %v437_v25  ;;  %1137 = vmatprep.mubr.f32.mxu0 %v1760_v8  ;;  %v674_v40 = vpop.permute.xlu0 %673 }
 0x235   :  { %1208 = vmatprep.mubr.f32.mxu1 %v1760_v8 }
 0x2f3   :  { %v745_v41 = vpop.f32.mrf.mxu0 }
 0x2f4   :  { %v746_v46 = vadd.f32 %v745_v41, %v674_v40  ;;  %v816_v50 = vpop.f32.mrf.mxu1 }
 0x2f5   :  { %v817_v56 = vadd.f32 %v816_v50, %v674_v40  ;;  %v747_v57 = vpop.f32.mrf.mxu0 }
 0x2f6   :  { %v2359_v59 = vadd.f32 %v746_v46, %v1806_v1  ;;  %v748_v55 = vadd.f32 %v747_v57, %v674_v40  ;;  %v818_v60 = vpop.f32.mrf.mxu1 }
 0x2f7   :  { %v819_v58 = vadd.f32 %v818_v60, %v674_v40  ;;  %v2365_v26 = vadd.f32 %v817_v56, %v1801_v0 }
 0x2f8   :  { %v2362_v34 = vmax.f32 %v2359_v59, 0.0  ;;  %v2368_v61 = vadd.f32 %v748_v55, %v1822_v5 }
 0x2f9   :  { %v2374_v13 = vadd.f32 %v819_v58, %v1811_v2  ;;  %v2379_v1 = vmax.f32 %v2365_v26, 0.0  ;;  %v1678_v2 = vld [vmem:[%s2817_s2 + $0x8] sm:$0xff] }
 0x2fa   :  { %v2371_v62 = vmax.f32 %v2368_v61, 0.0  ;;  %1005 = vrot.lane.b32.xlu1 %v2362_v34, %s1753_s29 }
 0x2fb   :  { %v2384_v0 = vmax.f32 %v2374_v13, 0.0 }
 0x2fc   :  { %1007 = vrot.lane.b32.xlu0 %v2371_v62, %s1753_s29 }
 0x2fe   :  { %1009 = vrot.lane.b32.xlu1 %v2379_v1, %s1753_s29 }
 0x300   :  { %1011 = vrot.lane.b32.xlu0 %v2384_v0, %s1753_s29 }
 0x302   :  { %981 = vrot.lane.b32.xlu1 %v2362_v34, %s1754_s0 }
 0x304   :  { %983 = vrot.lane.b32.xlu0 %v2371_v62, %s1754_s0 }
 0x306   :  { %985 = vrot.lane.b32.xlu1 %v2379_v1, %s1754_s0 }
 0x308   :  { %987 = vrot.lane.b32.xlu0 %v2384_v0, %s1754_s0 }
 0x30a   :  { %957 = vrot.lane.b32.xlu1 %v2362_v34, %s1755_s30 }
 0x30c   :  { %959 = vrot.lane.b32.xlu0 %v2371_v62, %s1755_s30 }
 0x30e   :  { %961 = vrot.lane.b32.xlu1 %v2379_v1, %s1755_s30 }
 0x310   :  { %963 = vrot.lane.b32.xlu0 %v2384_v0, %s1755_s30 }
 0x312   :  { %933 = vrot.lane.b32.xlu1 %v2362_v34, %s1756_s7 }
 0x314   :  { %935 = vrot.lane.b32.xlu0 %v2371_v62, %s1756_s7 }
 0x316   :  { %937 = vrot.lane.b32.xlu1 %v2379_v1, %s1756_s7 }
 0x318   :  { %939 = vrot.lane.b32.xlu0 %v2384_v0, %s1756_s7 }
 0x31a   :  { %905 = vrot.lane.b32.xlu1 %v2362_v34, %s1757_s8 }
 0x31c   :  { %907 = vrot.lane.b32.xlu0 %v2371_v62, %s1757_s8 }
 0x31e   :  { %909 = vrot.lane.b32.xlu1 %v2379_v1, %s1757_s8 }
 0x320   :  { %911 = vrot.lane.b32.xlu0 %v2384_v0, %s1757_s8 }
 0x322   :  { %881 = vrot.lane.b32.xlu1 %v2362_v34, %s1758_s9 }
 0x324   :  { %883 = vrot.lane.b32.xlu0 %v2371_v62, %s1758_s9 }
 0x326   :  { %885 = vrot.lane.b32.xlu1 %v2379_v1, %s1758_s9 }
 0x328   :  { %887 = vrot.lane.b32.xlu0 %v2384_v0, %s1758_s9 }
 0x32a   :  { %857 = vrot.lane.b32.xlu1 %v2362_v34, %s1759_s10 }
 0x32c   :  { %859 = vrot.lane.b32.xlu0 %v2371_v62, %s1759_s10 }
 0x32e   :  { %861 = vrot.lane.b32.xlu1 %v2379_v1, %s1759_s10 }
 0x330   :  { %863 = vrot.lane.b32.xlu0 %v2384_v0, %s1759_s10 }
 0x332   :  { %833 = vrot.lane.b32.xlu1 %v2362_v34, %s1762_s11 }
 0x334   :  { %835 = vrot.lane.b32.xlu0 %v2371_v62, %s1762_s11 }
 0x336   :  { %837 = vrot.lane.b32.xlu1 %v2379_v1, %s1762_s11 }
 0x338   :  { %839 = vrot.lane.b32.xlu0 %v2384_v0, %s1762_s11 }
 0x33a   :  { %1067 = vperm.xlu1 %1752, %v1678_v2  }
 0x36c   :  { %v1006_v5 = vpop.permute.xlu1 %1005 }
 0x36e   :  { %v1008_v14 = vpop.permute.xlu0 %1007 }
 0x36f   :  { %v1015_v4 = vsel %vm228_vm0, %v1006_v5, %v1008_v14 }
 0x370   :  { %v1010_v29 = vpop.permute.xlu1 %1009  ;;  %v1021_v30 = vmul.f32 %v1915_v17, %v1015_v4 }
 0x371   :  { %v1014_v20 = vsel %vm228_vm0, %v1008_v14, %v1010_v29 }
 0x372   :  { %v1022_v21 = vmul.f32 %v1905_v15, %v1014_v20  ;;  %v1012_v28 = vpop.permute.xlu0 %1011 }
 0x373   :  { %v1013_v6 = vsel %vm228_vm0, %v1010_v29, %v1012_v28  ;;  %v1016_v38 = vsel %vm228_vm0, %v1012_v28, %v1006_v5 }
 0x374   :  { %v1023_v25 = vmul.f32 %v1920_v18, %v1013_v6  ;;  %v1024_v39 = vmul.f32 %v1910_v16, %v1016_v38  ;;  %1087 = vmatprep.subr.mxu0 %v1022_v21  ;;  %v982_v40 = vpop.permute.xlu1 %981 }
 0x375   :  { %1088 = vmatpush1.msra.mxu0 %v1021_v30 }
 0x376   :  { %1158 = vmatprep.subr.mxu1 %v1024_v39  ;;  %v984_v41 = vpop.permute.xlu0 %983 }
 0x377   :  { %1159 = vmatpush1.msra.mxu1 %v1023_v25  ;;  %v991_v15 = vsel %vm202_vm1, %v982_v40, %v984_v41 }
 0x378   :  { %v986_v17 = vpop.permute.xlu1 %985  ;;  %v997_v18 = vmul.f32 %v1955_v37, %v991_v15 }
 0x379   :  { %v990_v46 = vsel %vm202_vm1, %v984_v41, %v986_v17 }
 0x37a   :  { %v998_v50 = vmul.f32 %v1938_v31, %v990_v46  ;;  %v988_v56 = vpop.permute.xlu0 %987 }
 0x37b   :  { %v989_v16 = vsel %vm202_vm1, %v986_v17, %v988_v56  ;;  %v992_v57 = vsel %vm202_vm1, %v988_v56, %v982_v40 }
 0x37c   :  { %v999_v55 = vmul.f32 %v1948_v33, %v989_v16  ;;  %v1000_v60 = vmul.f32 %v1943_v32, %v992_v57  ;;  %1089 = vmatprep.subr.mxu0 %v998_v50  ;;  %v958_v58 = vpop.permute.xlu1 %957 }
 0x37d   :  { %1090 = vmatpush1.msra.mxu0 %v997_v18 }
 0x37e   :  { %v960_v2 = vpop.permute.xlu0 %959  ;;  %1160 = vmatprep.subr.mxu1 %v1000_v60 }
 0x37f   :  { %1161 = vmatpush1.msra.mxu1 %v999_v55  ;;  %v967_v31 = vsel %vm176_vm2, %v958_v58, %v960_v2 }
 0x380   :  { %v962_v37 = vpop.permute.xlu1 %961  ;;  %v973_v33 = vmul.f32 %v1988_v53, %v967_v31 }
 0x381   :  { %v966_v5 = vsel %vm176_vm2, %v960_v2, %v962_v37 }
 0x382   :  { %v974_v14 = vmul.f32 %v1971_v47, %v966_v5  ;;  %v964_v4 = vpop.permute.xlu0 %963 }
 0x383   :  { %v965_v32 = vsel %vm176_vm2, %v962_v37, %v964_v4  ;;  %v968_v29 = vsel %vm176_vm2, %v964_v4, %v958_v58 }
 0x384   :  { %v975_v20 = vmul.f32 %v1981_v49, %v965_v32  ;;  %v976_v21 = vmul.f32 %v1976_v48, %v968_v29  ;;  %1091 = vmatprep.subr.mxu0 %v974_v14  ;;  %v934_v28 = vpop.permute.xlu1 %933 }
 0x385   :  { %1092 = vmatpush1.msra.mxu0 %v973_v33 }
 0x386   :  { %v936_v30 = vpop.permute.xlu0 %935  ;;  %1162 = vmatprep.subr.mxu1 %v976_v21 }
 0x387   :  { %1163 = vmatpush1.msra.mxu1 %v975_v20  ;;  %v943_v47 = vsel %vm150_vm3, %v934_v28, %v936_v30 }
 0x388   :  { %v938_v53 = vpop.permute.xlu1 %937  ;;  %v949_v49 = vmul.f32 %v2021_v19, %v943_v47 }
 0x389   :  { %v942_v6 = vsel %vm150_vm3, %v936_v30, %v938_v53 }
 0x38a   :  { %v950_v38 = vmul.f32 %v2004_v63, %v942_v6  ;;  %v940_v25 = vpop.permute.xlu0 %939 }
 0x38b   :  { %v941_v48 = vsel %vm150_vm3, %v938_v53, %v940_v25  ;;  %v944_v39 = vsel %vm150_vm3, %v940_v25, %v934_v28 }
 0x38c   :  { %v951_v40 = vmul.f32 %v2014_v10, %v941_v48  ;;  %v952_v41 = vmul.f32 %v2009_v9, %v944_v39  ;;  %1093 = vmatprep.subr.mxu0 %v950_v38  ;;  %v906_v15 = vpop.permute.xlu1 %905 }
 0x38d   :  { %1094 = vmatpush1.msra.mxu0 %v949_v49 }
 0x38e   :  { %v908_v17 = vpop.permute.xlu0 %907  ;;  %1095 = vmatprep.subr.mxu0 %v2371_v62  ;;  %1164 = vmatprep.subr.mxu1 %v952_v41 }
 0x38f   :  { %v915_v63 = vsel %vm120_vm4, %v906_v15, %v908_v17  ;;  %1096 = vmatpush1.msra.mxu0 %v2362_v34  ;;  %1165 = vmatpush1.msra.mxu1 %v951_v40 }
 0x390   :  { %v922_v19 = vmul.f32 %v2037_v27, %v915_v63  ;;  %1166 = vmatprep.subr.mxu1 %v2384_v0  ;;  %v910_v10 = vpop.permute.xlu1 %909 }
 0x391   :  { %1167 = vmatpush1.msra.mxu1 %v2379_v1  ;;  %v914_v9 = vsel %vm120_vm4, %v908_v17, %v910_v10 }
 0x392   :  { %v912_v46 = vpop.permute.xlu0 %911  ;;  %1097 = vmatprep.subr.mxu0 %v922_v19  ;;  %v923_v0 = vmul.f32 %v2059_v7, %v914_v9  ;;  %v1710_v19 = vld [vmem:[%s2820_s4 + $0x8] sm:$0xff] }
 0x393   :  { %v913_v62 = vsel %vm120_vm4, %v910_v10, %v912_v46  ;;  %v916_v50 = vsel %vm120_vm4, %v912_v46, %v906_v15  ;;  %v1736_v46 = vld [vmem:[%s2818_s5 + $0x108] sm:$0xff] }
 0x394   :  { %v921_v34 = vmul.f32 %v2049_v35, %v916_v50  ;;  %v924_v27 = vmul.f32 %v2054_v36, %v913_v62  ;;  %v882_v56 = vpop.permute.xlu1 %881  ;;  %v1735_v62 = vld [vmem:[%s2818_s5 + $0x100] sm:$0xff] }
 0x396   :  { %v884_v18 = vpop.permute.xlu0 %883  ;;  %1098 = vmatpush1.msra.mxu0 %v921_v34  ;;  %1168 = vmatprep.subr.mxu1 %v924_v27 }
 0x397   :  { %v891_v1 = vsel %vm94_vm5, %v882_v56, %v884_v18  ;;  %1169 = vmatpush1.msra.mxu1 %v923_v0  ;;  %v1738_v0 = vld [vmem:[%s2818_s5 + $0x118] sm:$0xff] }
 0x398   :  { %v898_v16 = vmul.f32 %v2074_v43, %v891_v1  ;;  %v886_v57 = vpop.permute.xlu1 %885 }
 0x399   :  { %v890_v55 = vsel %vm94_vm5, %v884_v18, %v886_v57 }
 0x39a   :  { %v888_v60 = vpop.permute.xlu0 %887  ;;  %1099 = vmatprep.subr.mxu0 %v898_v16  ;;  %v899_v31 = vmul.f32 %v2092_v54, %v890_v55 }
 0x39b   :  { %v889_v35 = vsel %vm94_vm5, %v886_v57, %v888_v60  ;;  %v892_v36 = vsel %vm94_vm5, %v888_v60, %v882_v56  ;;  %v1737_v56 = vld [vmem:[%s2818_s5 + $0x110] sm:$0xff] }
 0x39c   :  { %v897_v7 = vmul.f32 %v2082_v51, %v892_v36  ;;  %v900_v58 = vmul.f32 %v2087_v52, %v889_v35  ;;  %v858_v2 = vpop.permute.xlu1 %857 }
 0x39e   :  { %v860_v43 = vpop.permute.xlu0 %859  ;;  %1100 = vmatpush1.msra.mxu0 %v897_v7  ;;  %1170 = vmatprep.subr.mxu1 %v900_v58  ;;  %v1732_v58 = vld [vmem:[%s2818_s5 + $0xe8] sm:$0xff] }
 0x39f   :  { %v867_v37 = vsel %vm68_vm6, %v858_v2, %v860_v43  ;;  %1171 = vmatpush1.msra.mxu1 %v899_v31 }
 0x3a0   :  { %v874_v5 = vmul.f32 %v2107_v11, %v867_v37  ;;  %v862_v14 = vpop.permute.xlu1 %861 }
 0x3a1   :  { %v866_v4 = vsel %vm68_vm6, %v860_v43, %v862_v14 }
 0x3a2   :  { %v864_v33 = vpop.permute.xlu0 %863  ;;  %1101 = vmatprep.subr.mxu0 %v874_v5  ;;  %v875_v20 = vmul.f32 %v2125_v24, %v866_v4  ;;  %v1677_v24 = vld [vmem:[%s2819_s1 + $0x8] sm:$0xff]  ;;  %v1733_v5 = vld [vmem:[%s2818_s5 + $0xf0] sm:$0xff] }
 0x3a3   :  { %v865_v51 = vsel %vm68_vm6, %v862_v14, %v864_v33  ;;  %v868_v52 = vsel %vm68_vm6, %v864_v33, %v858_v2  ;;  %v1731_v2 = vld [vmem:[%s2818_s5 + $0xe0] sm:$0xff]  ;;  %v1734_v14 = vld [vmem:[%s2818_s5 + $0xf8] sm:$0xff] }
 0x3a4   :  { %v873_v54 = vmul.f32 %v2115_v22, %v868_v52  ;;  %v876_v32 = vmul.f32 %v2120_v23, %v865_v51  ;;  %v834_v29 = vpop.permute.xlu1 %833 }
 0x3a6   :  { %v836_v11 = vpop.permute.xlu0 %835  ;;  %1102 = vmatpush1.msra.mxu0 %v873_v54  ;;  %1172 = vmatprep.subr.mxu1 %v876_v32 }
 0x3a7   :  { %v843_v21 = vsel %vm43_vm7, %v834_v29, %v836_v11  ;;  %1173 = vmatpush1.msra.mxu1 %v875_v20 }
 0x3a8   :  { %v850_v28 = vmul.f32 %v843_v21, %v2140_v3  ;;  %v838_v30 = vpop.permute.xlu1 %837  ;;  %v1728_v21 = vld [vmem:[%s2818_s5 + $0xc8] sm:$0xff] }
 0x3a9   :  { %v842_v47 = vsel %vm43_vm7, %v836_v11, %v838_v30 }
 0x3aa   :  { %v840_v53 = vpop.permute.xlu0 %839  ;;  %1103 = vmatprep.subr.mxu0 %v850_v28  ;;  %v851_v38 = vmul.f32 %v842_v47, %v2158_v45  ;;  %v1727_v28 = vld [vmem:[%s2818_s5 + $0xc0] sm:$0xff] }
 0x3ab   :  { %v841_v22 = vsel %vm43_vm7, %v838_v30, %v840_v53  ;;  %v844_v23 = vsel %vm43_vm7, %v840_v53, %v834_v29 }
 0x3ac   :  { %v849_v6 = vmul.f32 %v844_v23, %v2148_v42  ;;  %v852_v3 = vmul.f32 %v841_v22, %v2153_v44  ;;  %v1729_v22 = vld [vmem:[%s2818_s5 + $0xd0] sm:$0xff]  ;;  %v1730_v23 = vld [vmem:[%s2818_s5 + $0xd8] sm:$0xff] }
 0x3ae   :  { %1104 = vmatpush1.msra.mxu0 %v849_v6  ;;  %1174 = vmatprep.subr.mxu1 %v852_v3 }
 0x3af   :  { %1707 = vmatmul.mubr.msk.f32.vlgmr.msra.gmra.mxu0 %vm287_vm8, %v1677_v24  ;;  %1175 = vmatpush1.msra.mxu1 %v851_v38 }
 0x3b0   :  { %1708 = vmatmul.mubr.msk.f32.vlgmr.msra.gmra.mxu1 %vm287_vm8, %v1677_v24  ;;  %1527 = vmatprep.mubr.f32.mxu0 %v1760_v8 }
 0x3b1   :  { %1598 = vmatprep.mubr.f32.mxu1 %v1760_v8 }
 0x3b5   :  { %v1068_v25 = vpop.permute.xlu1 %1067 }
 0x46f   :  { %v1139_v49 = vpop.f32.mrf.mxu0 }
 0x470   :  { %v1140_v48 = vadd.f32 %v1139_v49, %v1068_v25  ;;  %v1210_v39 = vpop.f32.mrf.mxu1 }
 0x471   :  { %v1141_v42 = vpop.f32.mrf.mxu0  ;;  %v1211_v44 = vadd.f32 %v1210_v39, %v1068_v25 }
 0x472   :  { %v2556_v40 = vmax.f32 %v1140_v48, 0.0  ;;  %v1142_v45 = vadd.f32 %v1141_v42, %v1068_v25  ;;  %v1212_v41 = vpop.f32.mrf.mxu1 }
 0x473   :  { %v1213_v17 = vadd.f32 %v1212_v41, %v1068_v25  ;;  %v2562_v63 = vmax.f32 %v1211_v44, 0.0  ;;  %v1724_v44 = vld [vmem:[%s2818_s5 + $0xa8] sm:$0xff] }
 0x474   :  { %v2558_v15 = vmax.f32 %v1142_v45, 0.0  ;;  %1395 = vrot.lane.b32.xlu0 %v2556_v40, %s1753_s29  ;;  %v1723_v45 = vld [vmem:[%s2818_s5 + $0xa0] sm:$0xff] }
 0x475   :  { %v2566_v8 = vmax.f32 %v1213_v17, 0.0 }
 0x476   :  { %1397 = vrot.lane.b32.xlu1 %v2558_v15, %s1753_s29 }
 0x478   :  { %1399 = vrot.lane.b32.xlu0 %v2562_v63, %s1753_s29 }
 0x47a   :  { %1401 = vrot.lane.b32.xlu1 %v2566_v8, %s1753_s29 }
 0x47c   :  { %1371 = vrot.lane.b32.xlu0 %v2556_v40, %s1754_s0 }
 0x47e   :  { %1373 = vrot.lane.b32.xlu1 %v2558_v15, %s1754_s0 }
 0x480   :  { %1375 = vrot.lane.b32.xlu0 %v2562_v63, %s1754_s0 }
 0x482   :  { %1377 = vrot.lane.b32.xlu1 %v2566_v8, %s1754_s0 }
 0x484   :  { %1347 = vrot.lane.b32.xlu0 %v2556_v40, %s1755_s30 }
 0x486   :  { %1349 = vrot.lane.b32.xlu1 %v2558_v15, %s1755_s30 }
 0x488   :  { %1351 = vrot.lane.b32.xlu0 %v2562_v63, %s1755_s30 }
 0x48a   :  { %1353 = vrot.lane.b32.xlu1 %v2566_v8, %s1755_s30 }
 0x48c   :  { %1323 = vrot.lane.b32.xlu0 %v2556_v40, %s1756_s7 }
 0x48e   :  { %1325 = vrot.lane.b32.xlu1 %v2558_v15, %s1756_s7 }
 0x490   :  { %1327 = vrot.lane.b32.xlu0 %v2562_v63, %s1756_s7 }
 0x492   :  { %1329 = vrot.lane.b32.xlu1 %v2566_v8, %s1756_s7 }
 0x494   :  { %1295 = vrot.lane.b32.xlu0 %v2556_v40, %s1757_s8 }
 0x496   :  { %1297 = vrot.lane.b32.xlu1 %v2558_v15, %s1757_s8 }
 0x498   :  { %1299 = vrot.lane.b32.xlu0 %v2562_v63, %s1757_s8 }
 0x49a   :  { %1301 = vrot.lane.b32.xlu1 %v2566_v8, %s1757_s8 }
 0x49c   :  { %1271 = vrot.lane.b32.xlu0 %v2556_v40, %s1758_s9 }
 0x49e   :  { %1273 = vrot.lane.b32.xlu1 %v2558_v15, %s1758_s9 }
 0x4a0   :  { %1275 = vrot.lane.b32.xlu0 %v2562_v63, %s1758_s9 }
 0x4a2   :  { %1277 = vrot.lane.b32.xlu1 %v2566_v8, %s1758_s9 }
 0x4a4   :  { %1247 = vrot.lane.b32.xlu0 %v2556_v40, %s1759_s10 }
 0x4a6   :  { %1249 = vrot.lane.b32.xlu1 %v2558_v15, %s1759_s10 }
 0x4a8   :  { %1251 = vrot.lane.b32.xlu0 %v2562_v63, %s1759_s10 }
 0x4aa   :  { %1253 = vrot.lane.b32.xlu1 %v2566_v8, %s1759_s10 }
 0x4ac   :  { %1223 = vrot.lane.b32.xlu0 %v2556_v40, %s1762_s11 }
 0x4ae   :  { %1225 = vrot.lane.b32.xlu1 %v2558_v15, %s1762_s11 }
 0x4b0   :  { %1227 = vrot.lane.b32.xlu0 %v2562_v63, %s1762_s11 }
 0x4b2   :  { %1229 = vrot.lane.b32.xlu1 %v2566_v8, %s1762_s11 }
 0x4b4   :  { %1457 = vperm.xlu0 %1751, %v1710_v19  }
 0x4e6   :  { %v1396_v10 = vpop.permute.xlu0 %1395 }
 0x4e8   :  { %v1398_v9 = vpop.permute.xlu1 %1397 }
 0x4e9   :  { %v1405_v50 = vsel %vm228_vm0, %v1396_v10, %v1398_v9 }
 0x4ea   :  { %v1400_v34 = vpop.permute.xlu0 %1399  ;;  %v1411_v16 = vmul.f32 %v1735_v62, %v1405_v50 }
 0x4eb   :  { %v1404_v27 = vsel %vm228_vm0, %v1398_v9, %v1400_v34  ;;  %v1726_v9 = vld [vmem:[%s2818_s5 + $0xb8] sm:$0xff] }
 0x4ec   :  { %v1412_v18 = vmul.f32 %v1736_v46, %v1404_v27  ;;  %v1402_v1 = vpop.permute.xlu1 %1401 }
 0x4ed   :  { %v1403_v57 = vsel %vm228_vm0, %v1400_v34, %v1402_v1  ;;  %v1406_v55 = vsel %vm228_vm0, %v1402_v1, %v1396_v10  ;;  %v1725_v10 = vld [vmem:[%s2818_s5 + $0xb0] sm:$0xff]  ;;  %v1720_v1 = vld [vmem:[%s2818_s5 + $0x68] sm:$0xff] }
 0x4ee   :  { %v1413_v60 = vmul.f32 %v1737_v56, %v1403_v57  ;;  %v1414_v35 = vmul.f32 %v1738_v0, %v1406_v55  ;;  %1477 = vmatprep.subr.mxu0 %v1412_v18  ;;  %v1372_v36 = vpop.permute.xlu0 %1371 }
 0x4ef   :  { %1478 = vmatpush1.msra.mxu0 %v1411_v16 }
 0x4f0   :  { %v1374_v7 = vpop.permute.xlu1 %1373  ;;  %1548 = vmatprep.subr.mxu1 %v1414_v35  ;;  %v1719_v35 = vld [vmem:[%s2818_s5 + $0x60] sm:$0xff] }
 0x4f1   :  { %1549 = vmatpush1.msra.mxu1 %v1413_v60  ;;  %v1381_v31 = vsel %vm202_vm1, %v1372_v36, %v1374_v7 }
 0x4f2   :  { %v1376_v43 = vpop.permute.xlu0 %1375  ;;  %v1387_v51 = vmul.f32 %v1731_v2, %v1381_v31 }
 0x4f3   :  { %v1380_v37 = vsel %vm202_vm1, %v1374_v7, %v1376_v43 }
 0x4f4   :  { %v1388_v4 = vmul.f32 %v1732_v58, %v1380_v37  ;;  %v1378_v33 = vpop.permute.xlu1 %1377  ;;  %v1716_v37 = vld [vmem:[%s2818_s5 + $0x48] sm:$0xff] }
 0x4f5   :  { %v1379_v52 = vsel %vm202_vm1, %v1376_v43, %v1378_v33  ;;  %v1382_v54 = vsel %vm202_vm1, %v1378_v33, %v1372_v36  ;;  %v1721_v36 = vld [vmem:[%s2818_s5 + $0x70] sm:$0xff] }
 0x4f6   :  { %v1389_v32 = vmul.f32 %v1733_v5, %v1379_v52  ;;  %v1390_v29 = vmul.f32 %v1734_v14, %v1382_v54  ;;  %1479 = vmatprep.subr.mxu0 %v1388_v4  ;;  %v1348_v20 = vpop.permute.xlu0 %1347  ;;  %v1718_v52 = vld [vmem:[%s2818_s5 + $0x58] sm:$0xff]  ;;  %v1717_v54 = vld [vmem:[%s2818_s5 + $0x50] sm:$0xff] }
 0x4f7   :  { %1480 = vmatpush1.msra.mxu0 %v1387_v51  ;;  %v1715_v51 = vld [vmem:[%s2818_s5 + $0x40] sm:$0xff] }
 0x4f8   :  { %v1350_v11 = vpop.permute.xlu1 %1349  ;;  %1550 = vmatprep.subr.mxu1 %v1390_v29 }
 0x4f9   :  { %1551 = vmatpush1.msra.mxu1 %v1389_v32  ;;  %v1357_v30 = vsel %vm176_vm2, %v1348_v20, %v1350_v11 }
 0x4fa   :  { %v1352_v47 = vpop.permute.xlu0 %1351  ;;  %v1363_v3 = vmul.f32 %v1727_v28, %v1357_v30 }
 0x4fb   :  { %v1356_v53 = vsel %vm176_vm2, %v1350_v11, %v1352_v47 }
 0x4fc   :  { %v1364_v24 = vmul.f32 %v1728_v21, %v1356_v53  ;;  %v1354_v6 = vpop.permute.xlu1 %1353  ;;  %v1712_v53 = vld [vmem:[%s2818_s5 + $0x28] sm:$0xff] }
 0x4fd   :  { %v1355_v38 = vsel %vm176_vm2, %v1352_v47, %v1354_v6  ;;  %v1358_v25 = vsel %vm176_vm2, %v1354_v6, %v1348_v20 }
 0x4fe   :  { %v1365_v49 = vmul.f32 %v1729_v22, %v1355_v38  ;;  %v1366_v48 = vmul.f32 %v1730_v23, %v1358_v25  ;;  %1481 = vmatprep.subr.mxu0 %v1364_v24  ;;  %v1324_v39 = vpop.permute.xlu0 %1323  ;;  %v1714_v38 = vld [vmem:[%s2818_s5 + $0x38] sm:$0xff]  ;;  %v1713_v25 = vld [vmem:[%s2818_s5 + $0x30] sm:$0xff] }
 0x4ff   :  { %1482 = vmatpush1.msra.mxu0 %v1363_v3  ;;  %v1711_v3 = vld [vmem:[%s2818_s5 + $0x20] sm:$0xff] }
 0x500   :  { %v1326_v42 = vpop.permute.xlu1 %1325  ;;  %1552 = vmatprep.subr.mxu1 %v1366_v48 }
 0x501   :  { %1553 = vmatpush1.msra.mxu1 %v1365_v49  ;;  %v1333_v41 = vsel %vm150_vm3, %v1324_v39, %v1326_v42 }
 0x502   :  { %v1328_v17 = vpop.permute.xlu0 %1327  ;;  %v1339_v50 = vmul.f32 %v1723_v45, %v1333_v41 }
 0x503   :  { %v1332_v19 = vsel %vm150_vm3, %v1326_v42, %v1328_v17 }
 0x504   :  { %v1340_v46 = vmul.f32 %v1724_v44, %v1332_v19  ;;  %v1330_v62 = vpop.permute.xlu1 %1329  ;;  %v1236_v19 = vld [vmem:[%s2818_s5 + $0x8] sm:$0xff] }
 0x505   :  { %v1331_v34 = vsel %vm150_vm3, %v1328_v17, %v1330_v62  ;;  %v1334_v27 = vsel %vm150_vm3, %v1330_v62, %v1324_v39 }
 0x506   :  { %v1341_v56 = vmul.f32 %v1725_v10, %v1331_v34  ;;  %v1342_v0 = vmul.f32 %v1726_v9, %v1334_v27  ;;  %1483 = vmatprep.subr.mxu0 %v1340_v46  ;;  %v1296_v18 = vpop.permute.xlu0 %1295  ;;  %v1238_v34 = vld [vmem:[%s2818_s5 + $0x18] sm:$0xff]  ;;  %v1237_v27 = vld [vmem:[%s2818_s5 + $0x10] sm:$0xff] }
 0x507   :  { %1484 = vmatpush1.msra.mxu0 %v1339_v50  ;;  %v1235_v50 = vld [vmem:[%s2818_s5] sm:$0xff] }
 0x508   :  { %v1298_v16 = vpop.permute.xlu1 %1297  ;;  %1485 = vmatprep.subr.mxu0 %v2558_v15  ;;  %1554 = vmatprep.subr.mxu1 %v1342_v0  ;;  %v1722_v15 = vld [vmem:[%s2818_s5 + $0x78] sm:$0xff] }
 0x509   :  { %v1305_v57 = vsel %vm120_vm4, %v1296_v18, %v1298_v16  ;;  %1486 = vmatpush1.msra.mxu0 %v2556_v40  ;;  %1555 = vmatpush1.msra.mxu1 %v1341_v56 }
 0x50a   :  { %v1312_v55 = vmul.f32 %v1720_v1, %v1305_v57  ;;  %1556 = vmatprep.subr.mxu1 %v2566_v8  ;;  %v1300_v60 = vpop.permute.xlu0 %1299 }
 0x50b   :  { %1557 = vmatpush1.msra.mxu1 %v2562_v63  ;;  %v1304_v40 = vsel %vm120_vm4, %v1298_v16, %v1300_v60 }
 0x50c   :  { %v1302_v7 = vpop.permute.xlu1 %1301  ;;  %1487 = vmatprep.subr.mxu0 %v1312_v55  ;;  %v1313_v43 = vmul.f32 %v1721_v36, %v1304_v40  ;;  %v1709_v55 = vld [vmem:[%s2821_s3 + $0x8] sm:$0xff] }
 0x50d   :  { %v1303_v63 = vsel %vm120_vm4, %v1300_v60, %v1302_v7  ;;  %v1306_v8 = vsel %vm120_vm4, %v1302_v7, %v1296_v18 }
 0x50e   :  { %v1311_v58 = vmul.f32 %v1719_v35, %v1306_v8  ;;  %v1314_v2 = vmul.f32 %v1722_v15, %v1303_v63  ;;  %v1272_v31 = vpop.permute.xlu0 %1271 }
 0x510   :  { %v1274_v5 = vpop.permute.xlu1 %1273  ;;  %1488 = vmatpush1.msra.mxu0 %v1311_v58  ;;  %1558 = vmatprep.subr.mxu1 %v1314_v2 }
 0x511   :  { %v1281_v14 = vsel %vm94_vm5, %v1272_v31, %v1274_v5  ;;  %1559 = vmatpush1.msra.mxu1 %v1313_v43 }
 0x512   :  { %v1288_v4 = vmul.f32 %v1716_v37, %v1281_v14  ;;  %v1276_v33 = vpop.permute.xlu0 %1275 }
 0x513   :  { %v1280_v32 = vsel %vm94_vm5, %v1274_v5, %v1276_v33 }
 0x514   :  { %v1278_v29 = vpop.permute.xlu1 %1277  ;;  %1489 = vmatprep.subr.mxu0 %v1288_v4  ;;  %v1289_v47 = vmul.f32 %v1717_v54, %v1280_v32 }
 0x515   :  { %v1279_v20 = vsel %vm94_vm5, %v1276_v33, %v1278_v29  ;;  %v1282_v11 = vsel %vm94_vm5, %v1278_v29, %v1272_v31 }
 0x516   :  { %v1287_v21 = vmul.f32 %v1715_v51, %v1282_v11  ;;  %v1290_v28 = vmul.f32 %v1718_v52, %v1279_v20  ;;  %v1248_v30 = vpop.permute.xlu0 %1247 }
 0x518   :  { %v1250_v22 = vpop.permute.xlu1 %1249  ;;  %1490 = vmatpush1.msra.mxu0 %v1287_v21  ;;  %1560 = vmatprep.subr.mxu1 %v1290_v28 }
 0x519   :  { %v1257_v23 = vsel %vm68_vm6, %v1248_v30, %v1250_v22  ;;  %1561 = vmatpush1.msra.mxu1 %v1289_v47 }
 0x51a   :  { %v1264_v24 = vmul.f32 %v1712_v53, %v1257_v23  ;;  %v1252_v6 = vpop.permute.xlu0 %1251 }
 0x51b   :  { %v1256_v49 = vsel %vm68_vm6, %v1250_v22, %v1252_v6 }
 0x51c   :  { %v1254_v48 = vpop.permute.xlu1 %1253  ;;  %1491 = vmatprep.subr.mxu0 %v1264_v24  ;;  %v1265_v17 = vmul.f32 %v1713_v25, %v1256_v49 }
 0x51d   :  { %v1255_v39 = vsel %vm68_vm6, %v1252_v6, %v1254_v48  ;;  %v1258_v42 = vsel %vm68_vm6, %v1254_v48, %v1248_v30 }
 0x51e   :  { %v1263_v44 = vmul.f32 %v1711_v3, %v1258_v42  ;;  %v1266_v45 = vmul.f32 %v1714_v38, %v1255_v39  ;;  %v1224_v41 = vpop.permute.xlu0 %1223 }
 0x520   :  { %v1226_v10 = vpop.permute.xlu1 %1225  ;;  %1492 = vmatpush1.msra.mxu0 %v1263_v44  ;;  %1562 = vmatprep.subr.mxu1 %v1266_v45 }
 0x521   :  { %v1233_v9 = vsel %vm43_vm7, %v1224_v41, %v1226_v10  ;;  %1563 = vmatpush1.msra.mxu1 %v1265_v17 }
 0x522   :  { %v1240_v46 = vmul.f32 %v1236_v19, %v1233_v9  ;;  %v1228_v62 = vpop.permute.xlu0 %1227 }
 0x523   :  { %v1232_v56 = vsel %vm43_vm7, %v1226_v10, %v1228_v62 }
 0x524   :  { %v1230_v0 = vpop.permute.xlu1 %1229  ;;  %1493 = vmatprep.subr.mxu0 %v1240_v46  ;;  %v1241_v60 = vmul.f32 %v1237_v27, %v1232_v56 }
 0x525   :  { %v1231_v18 = vsel %vm43_vm7, %v1228_v62, %v1230_v0  ;;  %v1234_v1 = vsel %vm43_vm7, %v1230_v0, %v1224_v41 }
 0x526   :  { %v1239_v16 = vmul.f32 %v1235_v50, %v1234_v1  ;;  %v1242_v57 = vmul.f32 %v1238_v34, %v1231_v18 }
 0x528   :  { %1494 = vmatpush1.msra.mxu0 %v1239_v16  ;;  %1564 = vmatprep.subr.mxu1 %v1242_v57 }
 0x529   :  { %1739 = vmatmul.mubr.msk.f32.vlgmr.msra.gmra.mxu0 %vm287_vm8, %v1709_v55  ;;  %1565 = vmatpush1.msra.mxu1 %v1241_v60 }
 0x52a   :  { %1740 = vmatmul.mubr.msk.f32.vlgmr.msra.gmra.mxu1 %vm287_vm8, %v1709_v55 }
 0x52f   :  { %v1458_v35 = vpop.permute.xlu0 %1457 }
 0x5e9   :  { %v1529_v15 = vpop.f32.mrf.mxu0 }
 0x5ea   :  { %v1530_v36 = vadd.f32 %v1529_v15, %v1458_v35  ;;  %v1600_v40 = vpop.f32.mrf.mxu1 }
 0x5eb   :  { %v1601_v12 = vadd.f32 %v1600_v40, %v1458_v35  ;;  %v1531_v7 = vpop.f32.mrf.mxu0 }
 0x5ec   :  { %v1605_v63 = vadd.f32 %v1530_v36, %v2359_v59  ;;  %v1532_v8 = vadd.f32 %v1531_v7, %v1458_v35  ;;  %v1602_v58 = vpop.f32.mrf.mxu1 }
 0x5ed   :  { %v1607_v2 = vadd.f32 %v1601_v12, %v2365_v26  ;;  %v1603_v31 = vadd.f32 %v1602_v58, %v1458_v35 }
 0x5ee   :  { %1609 = vst [vmem:[%s2822_s6] sm:$0xff] %v1605_v63  ;;  %v1606_v43 = vadd.f32 %v1532_v8, %v2368_v61 }
 0x5ef   :  { %1611 = vst [vmem:[%s2822_s6 + $0x10] sm:$0xff] %v1607_v2  ;;  %v1608_v37 = vadd.f32 %v1603_v31, %v2374_v13 }
 0x5f0   :  { %1610 = vst [vmem:[%s2822_s6 + $0x8] sm:$0xff] %v1606_v43 }
 0x5f1   :  { %1612 = vst [vmem:[%s2822_s6 + $0x18] sm:$0xff] %v1608_v37 }

</bundles_post_ra>
